<compile_context>
chip_gen: v7x
topology: tpu7x:2x2x1
jax: 0.10.0
libtpu: 0.0.40
codegen_flags: <defaults>
</compile_context>

<pallas_src>
import math
import jax
import jax.numpy as jnp
from jax.experimental import pallas as pl
from jax.experimental.pallas import tpu as pltpu

DIMS = [10, 64, 256, 256, 512, 256, 256, 256, 1]
BN_EPS = 1e-5


def _mlp_kernel(x_ref, w1_ref, w8_ref, b8_ref,
                w2_hbm, w3_hbm, w4_hbm, w5_hbm, w6_hbm, w7_hbm,
                out_ref,
                w2_buf, w3_buf, w4_buf, w5_buf, w6_buf, w7_buf,
                sems):
    hbm_refs = (w2_hbm, w3_hbm, w4_hbm, w5_hbm, w6_hbm, w7_hbm)
    bufs = (w2_buf, w3_buf, w4_buf, w5_buf, w6_buf, w7_buf)

    # Kick off all bulk-weight prefetches up front so the HBM->VMEM copies
    # stream in behind the serial layer chain (DMA overlapped with MXU work).
    copies = []
    for i in range(len(bufs)):
        cp = pltpu.make_async_copy(hbm_refs[i], bufs[i], sems.at[i])
        cp.start()
        copies.append(cp)

    inv_b = 1.0 / x_ref.shape[0]

    def bn_relu(y):
        # Fresh BatchNorm1d in training mode: batch stats, gamma=1, beta=0.
        # Single pass over y: var = E[y^2] - mean^2, clamped at 0 for safety.
        s1 = jnp.sum(y, axis=0, keepdims=True)
        s2 = jnp.sum(y * y, axis=0, keepdims=True)
        mean = s1 * inv_b
        var = jnp.maximum(s2 * inv_b - mean * mean, 0.0)
        yhat = (y - mean) * jax.lax.rsqrt(var + BN_EPS)
        return jnp.maximum(yhat, 0.0)

    def matmul_bf16(h, w):
        # bf16 operands, f32 accumulation on the MXU.
        return jnp.dot(h.astype(jnp.bfloat16), w,
                       preferred_element_type=jnp.float32)

    # Layer 1 (tiny weight, already auto-copied to VMEM). Bias dropped: BN's
    # mean subtraction cancels it exactly.
    h = bn_relu(matmul_bf16(x_ref[...], w1_ref[...]))

    # Layers 2..7 (weights streamed manually, waited just before use).
    for i in range(6):
        copies[i].wait()
        h = bn_relu(matmul_bf16(h, bufs[i][...]))

    # Layer 8: plain linear + bias, no BN/ReLU.
    out = matmul_bf16(h, w8_ref[...]) + b8_ref[...]
    out_ref[...] = out.astype(out_ref.dtype)


def feature_network(x, params):
    """x: (B, 10) float32.  params: list of (W (in,out) f32, b (1,out) f32)."""
    B = x.shape[0]
    ws = [w.astype(jnp.bfloat16) for (w, _) in params]
    b8 = params[-1][1].astype(jnp.float32)          # (1, 1) final-layer bias

    vmem = pl.BlockSpec(memory_space=pltpu.MemorySpace.VMEM)
    hbm_any = pl.BlockSpec(memory_space=pl.ANY)

    # Exactly-shaped VMEM scratch for the streamed weights W2..W7 + DMA sems.
    scratch = [pltpu.VMEM(ws[i].shape, jnp.bfloat16) for i in range(1, 7)]
    scratch.append(pltpu.SemaphoreType.DMA((6,)))

    return pl.pallas_call(
        _mlp_kernel,
        out_shape=jax.ShapeDtypeStruct((B, DIMS[-1]), jnp.float32),
        in_specs=[vmem, vmem, vmem, vmem] + [hbm_any] * 6,
        out_specs=vmem,
        scratch_shapes=scratch,
    )(x, ws[0], ws[7], b8, ws[1], ws[2], ws[3], ws[4], ws[5], ws[6])


def init_params(key):
    """Deterministic init matching nn.Linear's default U(-1/sqrt(fan_in), +)."""
    params = []
    for i in range(len(DIMS) - 1):
        fan_in, fan_out = DIMS[i], DIMS[i + 1]
        key, kw, kb = jax.random.split(key, 3)
        bound = 1.0 / math.sqrt(fan_in)
        w = jax.random.uniform(
            kw, (fan_in, fan_out), jnp.float32, minval=-bound, maxval=bound)
        b = jax.random.uniform(
            kb, (1, fan_out), jnp.float32, minval=-bound, maxval=bound)
        params.append((w, b))
    return params


def reference_forward(x, params):
    """Pure-JAX f32 reference of the original PyTorch forward pass."""
    h = x
    for i, (w, b) in enumerate(params):
        h = h @ w + b
        if i < len(params) - 1:
            mean = jnp.mean(h, axis=0, keepdims=True)
            var = jnp.mean((h - mean) ** 2, axis=0, keepdims=True)
            h = jnp.maximum((h - mean) / jnp.sqrt(var + BN_EPS), 0.0)
    return h


def matched_reference(x, params):
    """Reference mirroring the kernel's numerics (bf16 operands, f32 accum,
    biases 1..7 dropped, single-pass clamped variance)."""
    h = x
    n = len(params)
    for i, (w, b) in enumerate(params):
        h = jnp.dot(h.astype(jnp.bfloat16), w.astype(jnp.bfloat16),
                    preferred_element_type=jnp.float32)
        if i < n - 1:
            mean = jnp.mean(h, axis=0, keepdims=True)
            var = jnp.maximum(
                jnp.mean(h * h, axis=0, keepdims=True) - mean * mean, 0.0)
            h = jnp.maximum((h - mean) * jax.lax.rsqrt(var + BN_EPS), 0.0)
        else:
            h = h + b
    return h


if __name__ == "__main__":
    key = jax.random.PRNGKey(0)
    key, kx = jax.random.split(key)

    B = 8  # batch size (>1 required for batch-norm statistics)
    x = jax.random.normal(kx, (B, DIMS[0]), jnp.float32)
    params = init_params(key)

    out = jax.block_until_ready(feature_network(x, params))
    assert out.shape == (B, 1), out.shape

    # Tight check vs a reference that uses the same precision / algebra.
    ref_m = matched_reference(x, params)
    assert jnp.allclose(out, ref_m, atol=1e-2, rtol=1e-2), (
        "mismatch vs matched-precision reference:\n%s\n%s" % (out, ref_m))

    # Loose sanity check vs the exact f32 module semantics (bf16 weights +
    # exact bias cancellation only perturb rounding, not the math).
    ref_f32 = reference_forward(x, params)
    max_err = float(jnp.max(jnp.abs(out - ref_f32)))
    assert max_err < 0.25, "too far from f32 reference: max_err=%g" % max_err

    print("KERNEL_OK")
</pallas_src>

<mosaic_0001>
module attributes {stable_mosaic.version = 11 : i64} {
  func.func @_mlp_kernel(%arg0: memref<8x10xf32, #tpu.memory_space<vmem>>, %arg1: memref<10x64xbf16, #tpu.memory_space<vmem>>, %arg2: memref<256x1xbf16, #tpu.memory_space<vmem>>, %arg3: memref<1x1xf32, #tpu.memory_space<vmem>>, %arg4: memref<64x256xbf16, #tpu.memory_space<any>>, %arg5: memref<256x256xbf16, #tpu.memory_space<any>>, %arg6: memref<256x512xbf16, #tpu.memory_space<any>>, %arg7: memref<512x256xbf16, #tpu.memory_space<any>>, %arg8: memref<256x256xbf16, #tpu.memory_space<any>>, %arg9: memref<256x256xbf16, #tpu.memory_space<any>>, %arg10: memref<8x1xf32, #tpu.memory_space<vmem>>, %arg11: memref<64x256xbf16, #tpu.memory_space<vmem>>, %arg12: memref<256x256xbf16, #tpu.memory_space<vmem>>, %arg13: memref<256x512xbf16, #tpu.memory_space<vmem>>, %arg14: memref<512x256xbf16, #tpu.memory_space<vmem>>, %arg15: memref<256x256xbf16, #tpu.memory_space<vmem>>, %arg16: memref<256x256xbf16, #tpu.memory_space<vmem>>, %arg17: memref<6x!tpu.dma_semaphore, #tpu.memory_space<semaphore_mem>>) attributes {dimension_semantics = [], scalar_prefetch = 0 : i64, scratch_operands = 7 : i64, tpu.core_type = #tpu.core_type<tc>} {
    %c0_i32 = arith.constant 0 : i32
    %0 = tpu.memref_slice %arg17[%c0_i32] : memref<6x!tpu.dma_semaphore, #tpu.memory_space<semaphore_mem>> -> memref<1x!tpu.dma_semaphore, #tpu.memory_space<semaphore_mem>>
    %1 = tpu.memref_squeeze %0 : memref<1x!tpu.dma_semaphore, #tpu.memory_space<semaphore_mem>> -> memref<!tpu.dma_semaphore, #tpu.memory_space<semaphore_mem>>
    tpu.enqueue_dma source(%arg4 : memref<64x256xbf16, #tpu.memory_space<any>>) target(%arg11 : memref<64x256xbf16, #tpu.memory_space<vmem>>) target_semaphore(%1 : memref<!tpu.dma_semaphore, #tpu.memory_space<semaphore_mem>>)
    %c1_i32 = arith.constant 1 : i32
    %2 = tpu.memref_slice %arg17[%c1_i32] : memref<6x!tpu.dma_semaphore, #tpu.memory_space<semaphore_mem>> -> memref<1x!tpu.dma_semaphore, #tpu.memory_space<semaphore_mem>>
    %3 = tpu.memref_squeeze %2 : memref<1x!tpu.dma_semaphore, #tpu.memory_space<semaphore_mem>> -> memref<!tpu.dma_semaphore, #tpu.memory_space<semaphore_mem>>
    tpu.enqueue_dma source(%arg5 : memref<256x256xbf16, #tpu.memory_space<any>>) target(%arg12 : memref<256x256xbf16, #tpu.memory_space<vmem>>) target_semaphore(%3 : memref<!tpu.dma_semaphore, #tpu.memory_space<semaphore_mem>>)
    %c2_i32 = arith.constant 2 : i32
    %4 = tpu.memref_slice %arg17[%c2_i32] : memref<6x!tpu.dma_semaphore, #tpu.memory_space<semaphore_mem>> -> memref<1x!tpu.dma_semaphore, #tpu.memory_space<semaphore_mem>>
    %5 = tpu.memref_squeeze %4 : memref<1x!tpu.dma_semaphore, #tpu.memory_space<semaphore_mem>> -> memref<!tpu.dma_semaphore, #tpu.memory_space<semaphore_mem>>
    tpu.enqueue_dma source(%arg6 : memref<256x512xbf16, #tpu.memory_space<any>>) target(%arg13 : memref<256x512xbf16, #tpu.memory_space<vmem>>) target_semaphore(%5 : memref<!tpu.dma_semaphore, #tpu.memory_space<semaphore_mem>>)
    %c3_i32 = arith.constant 3 : i32
    %6 = tpu.memref_slice %arg17[%c3_i32] : memref<6x!tpu.dma_semaphore, #tpu.memory_space<semaphore_mem>> -> memref<1x!tpu.dma_semaphore, #tpu.memory_space<semaphore_mem>>
    %7 = tpu.memref_squeeze %6 : memref<1x!tpu.dma_semaphore, #tpu.memory_space<semaphore_mem>> -> memref<!tpu.dma_semaphore, #tpu.memory_space<semaphore_mem>>
    tpu.enqueue_dma source(%arg7 : memref<512x256xbf16, #tpu.memory_space<any>>) target(%arg14 : memref<512x256xbf16, #tpu.memory_space<vmem>>) target_semaphore(%7 : memref<!tpu.dma_semaphore, #tpu.memory_space<semaphore_mem>>)
    %c4_i32 = arith.constant 4 : i32
    %8 = tpu.memref_slice %arg17[%c4_i32] : memref<6x!tpu.dma_semaphore, #tpu.memory_space<semaphore_mem>> -> memref<1x!tpu.dma_semaphore, #tpu.memory_space<semaphore_mem>>
    %9 = tpu.memref_squeeze %8 : memref<1x!tpu.dma_semaphore, #tpu.memory_space<semaphore_mem>> -> memref<!tpu.dma_semaphore, #tpu.memory_space<semaphore_mem>>
    tpu.enqueue_dma source(%arg8 : memref<256x256xbf16, #tpu.memory_space<any>>) target(%arg15 : memref<256x256xbf16, #tpu.memory_space<vmem>>) target_semaphore(%9 : memref<!tpu.dma_semaphore, #tpu.memory_space<semaphore_mem>>)
    %c5_i32 = arith.constant 5 : i32
    %10 = tpu.memref_slice %arg17[%c5_i32] : memref<6x!tpu.dma_semaphore, #tpu.memory_space<semaphore_mem>> -> memref<1x!tpu.dma_semaphore, #tpu.memory_space<semaphore_mem>>
    %11 = tpu.memref_squeeze %10 : memref<1x!tpu.dma_semaphore, #tpu.memory_space<semaphore_mem>> -> memref<!tpu.dma_semaphore, #tpu.memory_space<semaphore_mem>>
    tpu.enqueue_dma source(%arg9 : memref<256x256xbf16, #tpu.memory_space<any>>) target(%arg16 : memref<256x256xbf16, #tpu.memory_space<vmem>>) target_semaphore(%11 : memref<!tpu.dma_semaphore, #tpu.memory_space<semaphore_mem>>)
    %c0 = arith.constant 0 : index
    %c0_0 = arith.constant 0 : index
    %12 = vector.load %arg0[%c0, %c0_0] : memref<8x10xf32, #tpu.memory_space<vmem>>, vector<8x10xf32>
    %c0_1 = arith.constant 0 : index
    %c0_2 = arith.constant 0 : index
    %13 = vector.load %arg1[%c0_1, %c0_2] : memref<10x64xbf16, #tpu.memory_space<vmem>>, vector<10x64xbf16>
    %14 = arith.truncf %12 : vector<8x10xf32> to vector<8x10xbf16>
    %cst = arith.constant dense<0.000000e+00> : vector<8x64xf32>
    %15 = tpu.matmul %14, %13, %cst {dimension_numbers = #tpu.dot_dimension_numbers<[1], [0], [0], [1], [0, 0, 1, 1], [], []>} : vector<8x10xbf16>, vector<10x64xbf16>, vector<8x64xf32> -> vector<8x64xf32>
    %cst_3 = arith.constant dense<0.000000e+00> : vector<64xf32>
    %16 = vector.multi_reduction <add>, %15, %cst_3 [0] : vector<8x64xf32> to vector<64xf32>
    %17 = vector.shape_cast %16 : vector<64xf32> to vector<1x64xf32>
    %18 = arith.mulf %15, %15 : vector<8x64xf32>
    %cst_4 = arith.constant dense<0.000000e+00> : vector<64xf32>
    %19 = vector.multi_reduction <add>, %18, %cst_4 [0] : vector<8x64xf32> to vector<64xf32>
    %20 = vector.shape_cast %19 : vector<64xf32> to vector<1x64xf32>
    %cst_5 = arith.constant 1.250000e-01 : f32
    %21 = vector.broadcast %cst_5 : f32 to vector<1x64xf32>
    %22 = arith.mulf %17, %21 : vector<1x64xf32>
    %cst_6 = arith.constant 1.250000e-01 : f32
    %23 = vector.broadcast %cst_6 : f32 to vector<1x64xf32>
    %24 = arith.mulf %20, %23 : vector<1x64xf32>
    %25 = arith.mulf %22, %22 : vector<1x64xf32>
    %26 = arith.subf %24, %25 : vector<1x64xf32>
    %cst_7 = arith.constant 0.000000e+00 : f32
    %27 = vector.broadcast %cst_7 : f32 to vector<1x64xf32>
    %28 = arith.maximumf %26, %27 : vector<1x64xf32>
    %29 = vector.broadcast %22 : vector<1x64xf32> to vector<8x64xf32>
    %30 = arith.subf %15, %29 : vector<8x64xf32>
    %cst_8 = arith.constant 9.99999974E-6 : f32
    %31 = vector.broadcast %cst_8 : f32 to vector<1x64xf32>
    %32 = arith.addf %28, %31 : vector<1x64xf32>
    %33 = math.rsqrt %32 : vector<1x64xf32>
    %34 = vector.broadcast %33 : vector<1x64xf32> to vector<8x64xf32>
    %35 = arith.mulf %30, %34 : vector<8x64xf32>
    %cst_9 = arith.constant 0.000000e+00 : f32
    %36 = vector.broadcast %cst_9 : f32 to vector<8x64xf32>
    %37 = arith.maximumf %35, %36 : vector<8x64xf32>
    %c0_i32_10 = arith.constant 0 : i32
    %38 = tpu.memref_slice %arg17[%c0_i32_10] : memref<6x!tpu.dma_semaphore, #tpu.memory_space<semaphore_mem>> -> memref<1x!tpu.dma_semaphore, #tpu.memory_space<semaphore_mem>>
    %39 = tpu.memref_squeeze %38 : memref<1x!tpu.dma_semaphore, #tpu.memory_space<semaphore_mem>> -> memref<!tpu.dma_semaphore, #tpu.memory_space<semaphore_mem>>
    tpu.wait_dma2 semaphore(%39 : memref<!tpu.dma_semaphore, #tpu.memory_space<semaphore_mem>>) src(%arg4 : memref<64x256xbf16, #tpu.memory_space<any>>) dst(%arg11 : memref<64x256xbf16, #tpu.memory_space<vmem>>)
    %c0_11 = arith.constant 0 : index
    %c0_12 = arith.constant 0 : index
    %40 = vector.load %arg11[%c0_11, %c0_12] : memref<64x256xbf16, #tpu.memory_space<vmem>>, vector<64x256xbf16>
    %41 = arith.truncf %37 : vector<8x64xf32> to vector<8x64xbf16>
    %cst_13 = arith.constant dense<0.000000e+00> : vector<8x256xf32>
    %42 = tpu.matmul %41, %40, %cst_13 {dimension_numbers = #tpu.dot_dimension_numbers<[1], [0], [0], [1], [0, 0, 1, 1], [], []>} : vector<8x64xbf16>, vector<64x256xbf16>, vector<8x256xf32> -> vector<8x256xf32>
    %cst_14 = arith.constant dense<0.000000e+00> : vector<256xf32>
    %43 = vector.multi_reduction <add>, %42, %cst_14 [0] : vector<8x256xf32> to vector<256xf32>
    %44 = vector.shape_cast %43 : vector<256xf32> to vector<1x256xf32>
    %45 = arith.mulf %42, %42 : vector<8x256xf32>
    %cst_15 = arith.constant dense<0.000000e+00> : vector<256xf32>
    %46 = vector.multi_reduction <add>, %45, %cst_15 [0] : vector<8x256xf32> to vector<256xf32>
    %47 = vector.shape_cast %46 : vector<256xf32> to vector<1x256xf32>
    %cst_16 = arith.constant 1.250000e-01 : f32
    %48 = vector.broadcast %cst_16 : f32 to vector<1x256xf32>
    %49 = arith.mulf %44, %48 : vector<1x256xf32>
    %cst_17 = arith.constant 1.250000e-01 : f32
    %50 = vector.broadcast %cst_17 : f32 to vector<1x256xf32>
    %51 = arith.mulf %47, %50 : vector<1x256xf32>
    %52 = arith.mulf %49, %49 : vector<1x256xf32>
    %53 = arith.subf %51, %52 : vector<1x256xf32>
    %cst_18 = arith.constant 0.000000e+00 : f32
    %54 = vector.broadcast %cst_18 : f32 to vector<1x256xf32>
    %55 = arith.maximumf %53, %54 : vector<1x256xf32>
    %56 = vector.broadcast %49 : vector<1x256xf32> to vector<8x256xf32>
    %57 = arith.subf %42, %56 : vector<8x256xf32>
    %cst_19 = arith.constant 9.99999974E-6 : f32
    %58 = vector.broadcast %cst_19 : f32 to vector<1x256xf32>
    %59 = arith.addf %55, %58 : vector<1x256xf32>
    %60 = math.rsqrt %59 : vector<1x256xf32>
    %61 = vector.broadcast %60 : vector<1x256xf32> to vector<8x256xf32>
    %62 = arith.mulf %57, %61 : vector<8x256xf32>
    %cst_20 = arith.constant 0.000000e+00 : f32
    %63 = vector.broadcast %cst_20 : f32 to vector<8x256xf32>
    %64 = arith.maximumf %62, %63 : vector<8x256xf32>
    %c1_i32_21 = arith.constant 1 : i32
    %65 = tpu.memref_slice %arg17[%c1_i32_21] : memref<6x!tpu.dma_semaphore, #tpu.memory_space<semaphore_mem>> -> memref<1x!tpu.dma_semaphore, #tpu.memory_space<semaphore_mem>>
    %66 = tpu.memref_squeeze %65 : memref<1x!tpu.dma_semaphore, #tpu.memory_space<semaphore_mem>> -> memref<!tpu.dma_semaphore, #tpu.memory_space<semaphore_mem>>
    tpu.wait_dma2 semaphore(%66 : memref<!tpu.dma_semaphore, #tpu.memory_space<semaphore_mem>>) src(%arg5 : memref<256x256xbf16, #tpu.memory_space<any>>) dst(%arg12 : memref<256x256xbf16, #tpu.memory_space<vmem>>)
    %c0_22 = arith.constant 0 : index
    %c0_23 = arith.constant 0 : index
    %67 = vector.load %arg12[%c0_22, %c0_23] : memref<256x256xbf16, #tpu.memory_space<vmem>>, vector<256x256xbf16>
    %68 = arith.truncf %64 : vector<8x256xf32> to vector<8x256xbf16>
    %cst_24 = arith.constant dense<0.000000e+00> : vector<8x256xf32>
    %69 = tpu.matmul %68, %67, %cst_24 {dimension_numbers = #tpu.dot_dimension_numbers<[1], [0], [0], [1], [0, 0, 1, 1], [], []>} : vector<8x256xbf16>, vector<256x256xbf16>, vector<8x256xf32> -> vector<8x256xf32>
    %cst_25 = arith.constant dense<0.000000e+00> : vector<256xf32>
    %70 = vector.multi_reduction <add>, %69, %cst_25 [0] : vector<8x256xf32> to vector<256xf32>
    %71 = vector.shape_cast %70 : vector<256xf32> to vector<1x256xf32>
    %72 = arith.mulf %69, %69 : vector<8x256xf32>
    %cst_26 = arith.constant dense<0.000000e+00> : vector<256xf32>
    %73 = vector.multi_reduction <add>, %72, %cst_26 [0] : vector<8x256xf32> to vector<256xf32>
    %74 = vector.shape_cast %73 : vector<256xf32> to vector<1x256xf32>
    %cst_27 = arith.constant 1.250000e-01 : f32
    %75 = vector.broadcast %cst_27 : f32 to vector<1x256xf32>
    %76 = arith.mulf %71, %75 : vector<1x256xf32>
    %cst_28 = arith.constant 1.250000e-01 : f32
    %77 = vector.broadcast %cst_28 : f32 to vector<1x256xf32>
    %78 = arith.mulf %74, %77 : vector<1x256xf32>
    %79 = arith.mulf %76, %76 : vector<1x256xf32>
    %80 = arith.subf %78, %79 : vector<1x256xf32>
    %cst_29 = arith.constant 0.000000e+00 : f32
    %81 = vector.broadcast %cst_29 : f32 to vector<1x256xf32>
    %82 = arith.maximumf %80, %81 : vector<1x256xf32>
    %83 = vector.broadcast %76 : vector<1x256xf32> to vector<8x256xf32>
    %84 = arith.subf %69, %83 : vector<8x256xf32>
    %cst_30 = arith.constant 9.99999974E-6 : f32
    %85 = vector.broadcast %cst_30 : f32 to vector<1x256xf32>
    %86 = arith.addf %82, %85 : vector<1x256xf32>
    %87 = math.rsqrt %86 : vector<1x256xf32>
    %88 = vector.broadcast %87 : vector<1x256xf32> to vector<8x256xf32>
    %89 = arith.mulf %84, %88 : vector<8x256xf32>
    %cst_31 = arith.constant 0.000000e+00 : f32
    %90 = vector.broadcast %cst_31 : f32 to vector<8x256xf32>
    %91 = arith.maximumf %89, %90 : vector<8x256xf32>
    %c2_i32_32 = arith.constant 2 : i32
    %92 = tpu.memref_slice %arg17[%c2_i32_32] : memref<6x!tpu.dma_semaphore, #tpu.memory_space<semaphore_mem>> -> memref<1x!tpu.dma_semaphore, #tpu.memory_space<semaphore_mem>>
    %93 = tpu.memref_squeeze %92 : memref<1x!tpu.dma_semaphore, #tpu.memory_space<semaphore_mem>> -> memref<!tpu.dma_semaphore, #tpu.memory_space<semaphore_mem>>
    tpu.wait_dma2 semaphore(%93 : memref<!tpu.dma_semaphore, #tpu.memory_space<semaphore_mem>>) src(%arg6 : memref<256x512xbf16, #tpu.memory_space<any>>) dst(%arg13 : memref<256x512xbf16, #tpu.memory_space<vmem>>)
    %c0_33 = arith.constant 0 : index
    %c0_34 = arith.constant 0 : index
    %94 = vector.load %arg13[%c0_33, %c0_34] : memref<256x512xbf16, #tpu.memory_space<vmem>>, vector<256x512xbf16>
    %95 = arith.truncf %91 : vector<8x256xf32> to vector<8x256xbf16>
    %cst_35 = arith.constant dense<0.000000e+00> : vector<8x512xf32>
    %96 = tpu.matmul %95, %94, %cst_35 {dimension_numbers = #tpu.dot_dimension_numbers<[1], [0], [0], [1], [0, 0, 1, 1], [], []>} : vector<8x256xbf16>, vector<256x512xbf16>, vector<8x512xf32> -> vector<8x512xf32>
    %cst_36 = arith.constant dense<0.000000e+00> : vector<512xf32>
    %97 = vector.multi_reduction <add>, %96, %cst_36 [0] : vector<8x512xf32> to vector<512xf32>
    %98 = vector.shape_cast %97 : vector<512xf32> to vector<1x512xf32>
    %99 = arith.mulf %96, %96 : vector<8x512xf32>
    %cst_37 = arith.constant dense<0.000000e+00> : vector<512xf32>
    %100 = vector.multi_reduction <add>, %99, %cst_37 [0] : vector<8x512xf32> to vector<512xf32>
    %101 = vector.shape_cast %100 : vector<512xf32> to vector<1x512xf32>
    %cst_38 = arith.constant 1.250000e-01 : f32
    %102 = vector.broadcast %cst_38 : f32 to vector<1x512xf32>
    %103 = arith.mulf %98, %102 : vector<1x512xf32>
    %cst_39 = arith.constant 1.250000e-01 : f32
    %104 = vector.broadcast %cst_39 : f32 to vector<1x512xf32>
    %105 = arith.mulf %101, %104 : vector<1x512xf32>
    %106 = arith.mulf %103, %103 : vector<1x512xf32>
    %107 = arith.subf %105, %106 : vector<1x512xf32>
    %cst_40 = arith.constant 0.000000e+00 : f32
    %108 = vector.broadcast %cst_40 : f32 to vector<1x512xf32>
    %109 = arith.maximumf %107, %108 : vector<1x512xf32>
    %110 = vector.broadcast %103 : vector<1x512xf32> to vector<8x512xf32>
    %111 = arith.subf %96, %110 : vector<8x512xf32>
    %cst_41 = arith.constant 9.99999974E-6 : f32
    %112 = vector.broadcast %cst_41 : f32 to vector<1x512xf32>
    %113 = arith.addf %109, %112 : vector<1x512xf32>
    %114 = math.rsqrt %113 : vector<1x512xf32>
    %115 = vector.broadcast %114 : vector<1x512xf32> to vector<8x512xf32>
    %116 = arith.mulf %111, %115 : vector<8x512xf32>
    %cst_42 = arith.constant 0.000000e+00 : f32
    %117 = vector.broadcast %cst_42 : f32 to vector<8x512xf32>
    %118 = arith.maximumf %116, %117 : vector<8x512xf32>
    %c3_i32_43 = arith.constant 3 : i32
    %119 = tpu.memref_slice %arg17[%c3_i32_43] : memref<6x!tpu.dma_semaphore, #tpu.memory_space<semaphore_mem>> -> memref<1x!tpu.dma_semaphore, #tpu.memory_space<semaphore_mem>>
    %120 = tpu.memref_squeeze %119 : memref<1x!tpu.dma_semaphore, #tpu.memory_space<semaphore_mem>> -> memref<!tpu.dma_semaphore, #tpu.memory_space<semaphore_mem>>
    tpu.wait_dma2 semaphore(%120 : memref<!tpu.dma_semaphore, #tpu.memory_space<semaphore_mem>>) src(%arg7 : memref<512x256xbf16, #tpu.memory_space<any>>) dst(%arg14 : memref<512x256xbf16, #tpu.memory_space<vmem>>)
    %c0_44 = arith.constant 0 : index
    %c0_45 = arith.constant 0 : index
    %121 = vector.load %arg14[%c0_44, %c0_45] : memref<512x256xbf16, #tpu.memory_space<vmem>>, vector<512x256xbf16>
    %122 = arith.truncf %118 : vector<8x512xf32> to vector<8x512xbf16>
    %cst_46 = arith.constant dense<0.000000e+00> : vector<8x256xf32>
    %123 = tpu.matmul %122, %121, %cst_46 {dimension_numbers = #tpu.dot_dimension_numbers<[1], [0], [0], [1], [0, 0, 1, 1], [], []>} : vector<8x512xbf16>, vector<512x256xbf16>, vector<8x256xf32> -> vector<8x256xf32>
    %cst_47 = arith.constant dense<0.000000e+00> : vector<256xf32>
    %124 = vector.multi_reduction <add>, %123, %cst_47 [0] : vector<8x256xf32> to vector<256xf32>
    %125 = vector.shape_cast %124 : vector<256xf32> to vector<1x256xf32>
    %126 = arith.mulf %123, %123 : vector<8x256xf32>
    %cst_48 = arith.constant dense<0.000000e+00> : vector<256xf32>
    %127 = vector.multi_reduction <add>, %126, %cst_48 [0] : vector<8x256xf32> to vector<256xf32>
    %128 = vector.shape_cast %127 : vector<256xf32> to vector<1x256xf32>
    %cst_49 = arith.constant 1.250000e-01 : f32
    %129 = vector.broadcast %cst_49 : f32 to vector<1x256xf32>
    %130 = arith.mulf %125, %129 : vector<1x256xf32>
    %cst_50 = arith.constant 1.250000e-01 : f32
    %131 = vector.broadcast %cst_50 : f32 to vector<1x256xf32>
    %132 = arith.mulf %128, %131 : vector<1x256xf32>
    %133 = arith.mulf %130, %130 : vector<1x256xf32>
    %134 = arith.subf %132, %133 : vector<1x256xf32>
    %cst_51 = arith.constant 0.000000e+00 : f32
    %135 = vector.broadcast %cst_51 : f32 to vector<1x256xf32>
    %136 = arith.maximumf %134, %135 : vector<1x256xf32>
    %137 = vector.broadcast %130 : vector<1x256xf32> to vector<8x256xf32>
    %138 = arith.subf %123, %137 : vector<8x256xf32>
    %cst_52 = arith.constant 9.99999974E-6 : f32
    %139 = vector.broadcast %cst_52 : f32 to vector<1x256xf32>
    %140 = arith.addf %136, %139 : vector<1x256xf32>
    %141 = math.rsqrt %140 : vector<1x256xf32>
    %142 = vector.broadcast %141 : vector<1x256xf32> to vector<8x256xf32>
    %143 = arith.mulf %138, %142 : vector<8x256xf32>
    %cst_53 = arith.constant 0.000000e+00 : f32
    %144 = vector.broadcast %cst_53 : f32 to vector<8x256xf32>
    %145 = arith.maximumf %143, %144 : vector<8x256xf32>
    %c4_i32_54 = arith.constant 4 : i32
    %146 = tpu.memref_slice %arg17[%c4_i32_54] : memref<6x!tpu.dma_semaphore, #tpu.memory_space<semaphore_mem>> -> memref<1x!tpu.dma_semaphore, #tpu.memory_space<semaphore_mem>>
    %147 = tpu.memref_squeeze %146 : memref<1x!tpu.dma_semaphore, #tpu.memory_space<semaphore_mem>> -> memref<!tpu.dma_semaphore, #tpu.memory_space<semaphore_mem>>
    tpu.wait_dma2 semaphore(%147 : memref<!tpu.dma_semaphore, #tpu.memory_space<semaphore_mem>>) src(%arg8 : memref<256x256xbf16, #tpu.memory_space<any>>) dst(%arg15 : memref<256x256xbf16, #tpu.memory_space<vmem>>)
    %c0_55 = arith.constant 0 : index
    %c0_56 = arith.constant 0 : index
    %148 = vector.load %arg15[%c0_55, %c0_56] : memref<256x256xbf16, #tpu.memory_space<vmem>>, vector<256x256xbf16>
    %149 = arith.truncf %145 : vector<8x256xf32> to vector<8x256xbf16>
    %cst_57 = arith.constant dense<0.000000e+00> : vector<8x256xf32>
    %150 = tpu.matmul %149, %148, %cst_57 {dimension_numbers = #tpu.dot_dimension_numbers<[1], [0], [0], [1], [0, 0, 1, 1], [], []>} : vector<8x256xbf16>, vector<256x256xbf16>, vector<8x256xf32> -> vector<8x256xf32>
    %cst_58 = arith.constant dense<0.000000e+00> : vector<256xf32>
    %151 = vector.multi_reduction <add>, %150, %cst_58 [0] : vector<8x256xf32> to vector<256xf32>
    %152 = vector.shape_cast %151 : vector<256xf32> to vector<1x256xf32>
    %153 = arith.mulf %150, %150 : vector<8x256xf32>
    %cst_59 = arith.constant dense<0.000000e+00> : vector<256xf32>
    %154 = vector.multi_reduction <add>, %153, %cst_59 [0] : vector<8x256xf32> to vector<256xf32>
    %155 = vector.shape_cast %154 : vector<256xf32> to vector<1x256xf32>
    %cst_60 = arith.constant 1.250000e-01 : f32
    %156 = vector.broadcast %cst_60 : f32 to vector<1x256xf32>
    %157 = arith.mulf %152, %156 : vector<1x256xf32>
    %cst_61 = arith.constant 1.250000e-01 : f32
    %158 = vector.broadcast %cst_61 : f32 to vector<1x256xf32>
    %159 = arith.mulf %155, %158 : vector<1x256xf32>
    %160 = arith.mulf %157, %157 : vector<1x256xf32>
    %161 = arith.subf %159, %160 : vector<1x256xf32>
    %cst_62 = arith.constant 0.000000e+00 : f32
    %162 = vector.broadcast %cst_62 : f32 to vector<1x256xf32>
    %163 = arith.maximumf %161, %162 : vector<1x256xf32>
    %164 = vector.broadcast %157 : vector<1x256xf32> to vector<8x256xf32>
    %165 = arith.subf %150, %164 : vector<8x256xf32>
    %cst_63 = arith.constant 9.99999974E-6 : f32
    %166 = vector.broadcast %cst_63 : f32 to vector<1x256xf32>
    %167 = arith.addf %163, %166 : vector<1x256xf32>
    %168 = math.rsqrt %167 : vector<1x256xf32>
    %169 = vector.broadcast %168 : vector<1x256xf32> to vector<8x256xf32>
    %170 = arith.mulf %165, %169 : vector<8x256xf32>
    %cst_64 = arith.constant 0.000000e+00 : f32
    %171 = vector.broadcast %cst_64 : f32 to vector<8x256xf32>
    %172 = arith.maximumf %170, %171 : vector<8x256xf32>
    %c5_i32_65 = arith.constant 5 : i32
    %173 = tpu.memref_slice %arg17[%c5_i32_65] : memref<6x!tpu.dma_semaphore, #tpu.memory_space<semaphore_mem>> -> memref<1x!tpu.dma_semaphore, #tpu.memory_space<semaphore_mem>>
    %174 = tpu.memref_squeeze %173 : memref<1x!tpu.dma_semaphore, #tpu.memory_space<semaphore_mem>> -> memref<!tpu.dma_semaphore, #tpu.memory_space<semaphore_mem>>
    tpu.wait_dma2 semaphore(%174 : memref<!tpu.dma_semaphore, #tpu.memory_space<semaphore_mem>>) src(%arg9 : memref<256x256xbf16, #tpu.memory_space<any>>) dst(%arg16 : memref<256x256xbf16, #tpu.memory_space<vmem>>)
    %c0_66 = arith.constant 0 : index
    %c0_67 = arith.constant 0 : index
    %175 = vector.load %arg16[%c0_66, %c0_67] : memref<256x256xbf16, #tpu.memory_space<vmem>>, vector<256x256xbf16>
    %176 = arith.truncf %172 : vector<8x256xf32> to vector<8x256xbf16>
    %cst_68 = arith.constant dense<0.000000e+00> : vector<8x256xf32>
    %177 = tpu.matmul %176, %175, %cst_68 {dimension_numbers = #tpu.dot_dimension_numbers<[1], [0], [0], [1], [0, 0, 1, 1], [], []>} : vector<8x256xbf16>, vector<256x256xbf16>, vector<8x256xf32> -> vector<8x256xf32>
    %cst_69 = arith.constant dense<0.000000e+00> : vector<256xf32>
    %178 = vector.multi_reduction <add>, %177, %cst_69 [0] : vector<8x256xf32> to vector<256xf32>
    %179 = vector.shape_cast %178 : vector<256xf32> to vector<1x256xf32>
    %180 = arith.mulf %177, %177 : vector<8x256xf32>
    %cst_70 = arith.constant dense<0.000000e+00> : vector<256xf32>
    %181 = vector.multi_reduction <add>, %180, %cst_70 [0] : vector<8x256xf32> to vector<256xf32>
    %182 = vector.shape_cast %181 : vector<256xf32> to vector<1x256xf32>
    %cst_71 = arith.constant 1.250000e-01 : f32
    %183 = vector.broadcast %cst_71 : f32 to vector<1x256xf32>
    %184 = arith.mulf %179, %183 : vector<1x256xf32>
    %cst_72 = arith.constant 1.250000e-01 : f32
    %185 = vector.broadcast %cst_72 : f32 to vector<1x256xf32>
    %186 = arith.mulf %182, %185 : vector<1x256xf32>
    %187 = arith.mulf %184, %184 : vector<1x256xf32>
    %188 = arith.subf %186, %187 : vector<1x256xf32>
    %cst_73 = arith.constant 0.000000e+00 : f32
    %189 = vector.broadcast %cst_73 : f32 to vector<1x256xf32>
    %190 = arith.maximumf %188, %189 : vector<1x256xf32>
    %191 = vector.broadcast %184 : vector<1x256xf32> to vector<8x256xf32>
    %192 = arith.subf %177, %191 : vector<8x256xf32>
    %cst_74 = arith.constant 9.99999974E-6 : f32
    %193 = vector.broadcast %cst_74 : f32 to vector<1x256xf32>
    %194 = arith.addf %190, %193 : vector<1x256xf32>
    %195 = math.rsqrt %194 : vector<1x256xf32>
    %196 = vector.broadcast %195 : vector<1x256xf32> to vector<8x256xf32>
    %197 = arith.mulf %192, %196 : vector<8x256xf32>
    %cst_75 = arith.constant 0.000000e+00 : f32
    %198 = vector.broadcast %cst_75 : f32 to vector<8x256xf32>
    %199 = arith.maximumf %197, %198 : vector<8x256xf32>
    %c0_76 = arith.constant 0 : index
    %c0_77 = arith.constant 0 : index
    %200 = vector.load %arg2[%c0_76, %c0_77] : memref<256x1xbf16, #tpu.memory_space<vmem>>, vector<256x1xbf16>
    %201 = arith.truncf %199 : vector<8x256xf32> to vector<8x256xbf16>
    %cst_78 = arith.constant dense<0.000000e+00> : vector<8x1xf32>
    %202 = tpu.matmul %201, %200, %cst_78 {dimension_numbers = #tpu.dot_dimension_numbers<[1], [0], [0], [1], [0, 0, 1, 1], [], []>} : vector<8x256xbf16>, vector<256x1xbf16>, vector<8x1xf32> -> vector<8x1xf32>
    %c0_79 = arith.constant 0 : index
    %c0_80 = arith.constant 0 : index
    %203 = vector.load %arg3[%c0_79, %c0_80] : memref<1x1xf32, #tpu.memory_space<vmem>>, vector<1x1xf32>
    %204 = vector.broadcast %203 : vector<1x1xf32> to vector<8x1xf32>
    %205 = arith.addf %202, %204 : vector<8x1xf32>
    %c0_81 = arith.constant 0 : index
    %c0_82 = arith.constant 0 : index
    %206 = vector.load %arg10[%c0_81, %c0_82] : memref<8x1xf32, #tpu.memory_space<vmem>>, vector<8x1xf32>
    tpu.vector_store %arg10[%c0_81, %c0_82], %205 {strides = array<i32>} : memref<8x1xf32, #tpu.memory_space<vmem>>, vector<8x1xf32>,
    return
  }
}

</mosaic_0001>

<bundles_post_ra>
// kernel: tpu_custom_call.1
= control target key start
LH: loop header
LB: loop body
LE: loop exit
PB: predicated region body
PF: predicated region fallthrough
CT: control target
= control target key end

     0   :  { %s2021_s0 = inlined_call_operand.vmem [shape: f32[8,10], index: 0, kind: input, shape index: {}]   ;;  %s2022_s1 = inlined_call_operand.vmem [shape: bf16[10,64], index: 1, kind: input, shape index: {}]   ;;  %s2023_s2 = inlined_call_operand.vmem [shape: bf16[256,1], index: 2, kind: input, shape index: {}]   ;;  %s2024_s3 = inlined_call_operand.<no memory space> [shape: f32[1,1], index: 3, kind: input, shape index: {}]   ;;  %s2025_s4 = inlined_call_operand.vmem [shape: bf16[64,256], index: 4, kind: input, shape index: {}]   ;;  %s2026_s5 = inlined_call_operand.hbm [shape: bf16[256,256], index: 5, kind: input, shape index: {}]   ;;  %s2027_s6 = inlined_call_operand.hbm [shape: bf16[256,512], index: 6, kind: input, shape index: {}]   ;;  %s2028_s7 = inlined_call_operand.hbm [shape: bf16[512,256], index: 7, kind: input, shape index: {}]   ;;  %s2029_s8 = inlined_call_operand.hbm [shape: bf16[256,256], index: 8, kind: input, shape index: {}]   ;;  %s2030_s9 = inlined_call_operand.hbm [shape: bf16[256,256], index: 9, kind: input, shape index: {}]   ;;  %s2031_s10 = inlined_call_operand.vmem [shape: f32[8,1], index: 10, kind: output, shape index: {}]  }
   0x1   :  { %v15_v0 = vstv %s2024_s3 }
   0x2   :  { %16 = vst [vmem:[#allocation9] sm:$0x1] %v15_v0 }
   0x3   :  { %v43_v1 = vld [vmem:[%s2025_s4] sm:$0xf]  ;;  %v45_v2 = vld [vmem:[%s2025_s4 + $0x8] sm:$0xf]  ;;  %v47_v3 = vld [vmem:[%s2025_s4 + $0x4] sm:$0xf] }
   0x4   :  { %44 = vst [vmem:[#allocation2] sm:$0xf] %v43_v1  ;;  %46 = vst [vmem:[#allocation2 + $0x4] sm:$0xf] %v45_v2  ;;  %v49_v4 = vld [vmem:[%s2025_s4 + $0xc] sm:$0xff]   ;;  %v57_v7 = vld [vmem:[%s2025_s4 + $0x1c] sm:$0xff]  }
   0x5   :  { %48 = vst [vmem:[#allocation2 + $0x8] sm:$0xf] %v47_v3  ;;  %v53_v5 = vld [vmem:[%s2025_s4 + $0x18] sm:$0xf]  ;;  %v55_v6 = vld [vmem:[%s2025_s4 + $0x14] sm:$0xf] }
   0x6   :  { %50 = vst [vmem:[#allocation2 + $0xc] sm:$0xff] %v49_v4   ;;  %54 = vst [vmem:[#allocation2 + $0x14] sm:$0xf] %v53_v5  ;;  %v61_v8 = vld [vmem:[%s2025_s4 + $0x28] sm:$0xf]  ;;  %v65_v10 = vld [vmem:[%s2025_s4 + $0x2c] sm:$0xff]  }
   0x7   :  { %56 = vst [vmem:[#allocation2 + $0x18] sm:$0xf] %v55_v6  ;;  %v63_v9 = vld [vmem:[%s2025_s4 + $0x24] sm:$0xf]  ;;  %58 = vst [vmem:[#allocation2 + $0x1c] sm:$0xff] %v57_v7  }
   0x8   :  { %62 = vst [vmem:[#allocation2 + $0x24] sm:$0xf] %v61_v8  ;;  %64 = vst [vmem:[#allocation2 + $0x28] sm:$0xf] %v63_v9  ;;  %v69_v11 = vld [vmem:[%s2025_s4 + $0x38] sm:$0xf] }
   0x9   :  { %v71_v12 = vld [vmem:[%s2025_s4 + $0x34] sm:$0xf]  ;;  %66 = vst [vmem:[#allocation2 + $0x2c] sm:$0xff] %v65_v10   ;;  %70 = vst [vmem:[#allocation2 + $0x34] sm:$0xf] %v69_v11 }
   0xa   :  { %72 = vst [vmem:[#allocation2 + $0x38] sm:$0xf] %v71_v12  ;;  %v73_v13 = vld [vmem:[%s2025_s4 + $0x3c] sm:$0xf] }
   0xb   :  { %74 = vst [vmem:[#allocation2 + $0x3c] sm:$0xf] %v73_v13 }
   0xc   :  { %137 = vsyncadd [#allocation8], 1024  ;;  %s143_s20 = sld [smem:[#allocation0]]   ;;  %s1705_s21 = smov [#allocation3]   ;;  %v1706_v14 = vmov 0.0   ;;  %vm1708_vm0 = vmmov 0  }
   0xd   :  { %s151_s22 = sshll.u32 %s1705_s21, 4  ;;  %1612 = vmatprep.subr.bf16.mxu1 %v1706_v14  ;;  %s1707_s3 = smov 256   ;;  %1614 = vmatprep.mubr.msk.bf16.mxu1 %vm1708_vm0, %v1706_v14  ;;  %vm327_vm1 = vcmask 1044480   ;;  %vm323_vm2 = vcmask 80896   ;;  %vm371_vm3 = vcmask 523264   ;;  %s152_s22 = int_to_ptr.vmem [resolvable:$true] %s151_s22 }
   0xe   :  { %155 = sst [smem:[#allocation12]] %s1707_s3  ;;  %s1709_s23 = smov 2  }
   0xf   :  { %157 = sst [smem:[#allocation12 + $0x1]] %s1707_s3  ;;  %s1710_s24 = smov 64  }
  0x10   :  { %159 = sst [smem:[#allocation12 + $0x2]] %s1709_s23  ;;  %s1711_s25 = smov 128  }
  0x11   :  { %161 = sst [smem:[#allocation12 + $0x3]] %s1710_s24  ;;  %s1712_s27 = smov 4  }
  0x12   :  { %s1552_s4 = sshll.u32 %s143_s20, 26  ;;  %163 = sst [smem:[#allocation12 + $0x4]] %s1711_s25 }
  0x13   :  { %s1831_s26 = sadd.s32 134217728, %s1552_s4  ;;  %165 = sst [smem:[#allocation12 + $0x5]] %s1709_s23 }
  0x14   :  { %167 = sst [smem:[#allocation12 + $0x6]] %s1711_s25  ;;  %s1713_s28 = smov [#allocation8 + $0x1]  }
  0x15   :  { %169 = sst [smem:[#allocation12 + $0x7]] %s1710_s24  ;;  %s1714_s29 = smov [#allocation11]  }
  0x16   :  { %171 = sst [smem:[#allocation12 + $0x8]] %s1712_s27  ;;  %s1715_s12 = smov 512  }
  0x17   :  { %173 = dma.general %s2026_s5, 4096, %s152_s22, %s1713_s28, %s1714_s29, [#allocation12], %s1831_s26, 0  }
  0x18   :  { %194 = sst [smem:[#allocation14 + $0x2]] %s1712_s27  ;;  %s1716_s13 = smov [#allocation4]  }
  0x19   :  { %190 = sst [smem:[#allocation14]] %s1715_s12  ;;  %s186_s14 = sshll.u32 %s1716_s13, 4  ;;  %s187_s14 = int_to_ptr.vmem [resolvable:$true] %s186_s14 }
  0x1a   :  { %192 = sst [smem:[#allocation14 + $0x1]] %s1715_s12  ;;  %s1717_s5 = smov [#allocation8 + $0x2]  }
  0x1b   :  { %196 = sst [smem:[#allocation14 + $0x3]] %s1710_s24  ;;  %s1718_s15 = smov [#allocation13]  }
  0x1c   :  { %198 = sst [smem:[#allocation14 + $0x4]] %s1711_s25  ;;  %s1719_s18 = smov [#allocation5]  }
  0x1d   :  { %200 = sst [smem:[#allocation14 + $0x5]] %s1709_s23  ;;  %s221_s19 = sshll.u32 %s1719_s18, 4  ;;  %s222_s19 = int_to_ptr.vmem [resolvable:$true] %s221_s19 }
  0x1e   :  { %202 = sst [smem:[#allocation14 + $0x6]] %s1707_s3  ;;  %s1721_s20 = smov [#allocation15]  }
  0x1f   :  { %204 = sst [smem:[#allocation14 + $0x7]] %s1710_s24  ;;  %s1722_s4 = smov [#allocation6]  }
  0x20   :  { %206 = sst [smem:[#allocation14 + $0x8]] %s1712_s27  ;;  %s256_s28 = sshll.u32 %s1722_s4, 4  ;;  %s257_s28 = int_to_ptr.vmem [resolvable:$true] %s256_s28 }
  0x21   :  { %208 = dma.general %s2027_s6, 8192, %s187_s14, %s1717_s5, %s1718_s15, [#allocation14], %s1831_s26, 0  }
  0x22   :  { %225 = sst [smem:[#allocation16]] %s1707_s3  ;;  %s1720_s6 = smov [#allocation8 + $0x3]  }
  0x23   :  { %227 = sst [smem:[#allocation16 + $0x1]] %s1707_s3  ;;  %s1724_s29 = smov [#allocation17]  }
  0x24   :  { %229 = sst [smem:[#allocation16 + $0x2]] %s1709_s23  ;;  %s1725_s12 = smov [#allocation7]  }
  0x25   :  { %231 = sst [smem:[#allocation16 + $0x3]] %s1710_s24  ;;  %s291_s13 = sshll.u32 %s1725_s12, 4  ;;  %s292_s13 = int_to_ptr.vmem [resolvable:$true] %s291_s13 }
  0x26   :  { %233 = sst [smem:[#allocation16 + $0x4]] %s1711_s25  ;;  %s1727_s14 = smov [#allocation19]  }
  0x27   :  { %235 = sst [smem:[#allocation16 + $0x5]] %s1709_s23 }
  0x28   :  { %237 = sst [smem:[#allocation16 + $0x6]] %s1711_s25 }
  0x29   :  { %239 = sst [smem:[#allocation16 + $0x7]] %s1710_s24 }
  0x2a   :  { %241 = sst [smem:[#allocation16 + $0x8]] %s1712_s27 }
  0x2b   :  { %243 = dma.general %s2028_s7, 8192, %s222_s19, %s1720_s6, %s1721_s20, [#allocation16], %s1831_s26, 0  }
  0x2c   :  { %260 = sst [smem:[#allocation18]] %s1707_s3  ;;  %s1723_s7 = smov [#allocation8 + $0x4]  }
  0x2d   :  { %262 = sst [smem:[#allocation18 + $0x1]] %s1707_s3 }
  0x2e   :  { %264 = sst [smem:[#allocation18 + $0x2]] %s1709_s23 }
  0x2f   :  { %266 = sst [smem:[#allocation18 + $0x3]] %s1710_s24 }
  0x30   :  { %268 = sst [smem:[#allocation18 + $0x4]] %s1711_s25 }
  0x31   :  { %270 = sst [smem:[#allocation18 + $0x5]] %s1709_s23 }
  0x32   :  { %272 = sst [smem:[#allocation18 + $0x6]] %s1711_s25 }
  0x33   :  { %274 = sst [smem:[#allocation18 + $0x7]] %s1710_s24 }
  0x34   :  { %276 = sst [smem:[#allocation18 + $0x8]] %s1712_s27 }
  0x35   :  { %278 = dma.general %s2029_s8, 4096, %s257_s28, %s1723_s7, %s1724_s29, [#allocation18], %s1831_s26, 0  }
  0x36   :  { %295 = sst [smem:[#allocation20]] %s1707_s3  ;;  %s1726_s8 = smov [#allocation8 + $0x5]  }
  0x37   :  { %297 = sst [smem:[#allocation20 + $0x1]] %s1707_s3 }
  0x38   :  { %299 = sst [smem:[#allocation20 + $0x2]] %s1709_s23 }
  0x39   :  { %301 = sst [smem:[#allocation20 + $0x3]] %s1710_s24 }
  0x3a   :  { %303 = sst [smem:[#allocation20 + $0x4]] %s1711_s25 }
  0x3b   :  { %305 = sst [smem:[#allocation20 + $0x5]] %s1709_s23 }
  0x3c   :  { %307 = sst [smem:[#allocation20 + $0x6]] %s1711_s25 }
  0x3d   :  { %309 = sst [smem:[#allocation20 + $0x7]] %s1710_s24 }
  0x3e   :  { %311 = sst [smem:[#allocation20 + $0x8]] %s1712_s27 }
  0x3f   :  { %313 = dma.general %s2030_s9, 4096, %s292_s13, %s1726_s8, %s1727_s14, [#allocation20], %s1831_s26, 0  }
  0x40   :  { %v1646_v15 = vld [vmem:[%s2022_s1] sm:$0x1f]  }
  0x41   :  { %v314_v16 = vld [vmem:[%s2021_s0] sm:$0xff]  ;;  %v329_v17 = vsel %vm327_vm1, %v1646_v15, 0 }
  0x42   :  { %v317_v18 = vpack.c.bf16 %v314_v16, %v314_v16  ;;  %1613 = vmatpush3.bf16.msra.mxu1 %v329_v17 }
  0x45   :  { %1615 = vmatmul.mubr.msk.bf16.vlgmr.msra.gmra.mrb[0].mxu1 %vm323_vm2, %v317_v18 }
 0x118   :  { %v365_v19 = vpop.f32.mrb[0].mxu1 }
 0x119   :  { %v372_v20 = vsel %vm371_vm3, %v365_v19, 0.0  ;;  %v379_v21 = vmul.f32 %v365_v19, %v365_v19  ;;  %v1616_v22 = vpop.f32.mrb[1].mxu1 }
 0x11a   :  { %v373_v23 = vrot.slane %v372_v20, 4  ;;  %v368_v24 = vpop.f32.mrb[2].mxu1 }
 0x11b   :  { %v380_v25 = vsel %vm371_vm3, %v379_v21, 0.0  ;;  %v1617_v26 = vpop.f32.mrb[3].mxu1 }
 0x11c   :  { %v374_v27 = vadd.f32 %v373_v23, %v372_v20  ;;  %v381_v28 = vrot.slane %v380_v25, 4 }
 0x11e   :  { %v375_v29 = vrot.slane %v374_v27, 2  ;;  %v382_v30 = vadd.f32 %v381_v28, %v380_v25 }
 0x120   :  { %v376_v31 = vadd.f32 %v375_v29, %v374_v27  ;;  %v383_v32 = vrot.slane %v382_v30, 2 }
 0x122   :  { %v377_v33 = vrot.slane %v376_v31, 1  ;;  %v384_v34 = vadd.f32 %v383_v32, %v382_v30 }
 0x124   :  { %v378_v35 = vadd.f32 %v377_v33, %v376_v31  ;;  %v385_v36 = vrot.slane %v384_v34, 1 }
 0x126   :  { %v386_v37 = vadd.f32 %v385_v36, %v384_v34  ;;  %v387_v38 = vmul.f32 0.125, %v378_v35 }
 0x128   :  { %v388_v39 = vmul.f32 0.125, %v386_v37  ;;  %v389_v40 = vmul.f32 %v387_v38, %v387_v38  ;;  %v392_v44 = vsub.f32 %v365_v19, %v387_v38 }
 0x12a   :  { %v390_v41 = vsub.f32 %v388_v39, %v389_v40 }
 0x12c   :  { %v391_v42 = vmax.f32 %v390_v41, 0.0 }
 0x12e   :  { %v393_v43 = vadd.f32 1e-05, %v391_v42 }
 0x130   :  { %1647 = vrsqrt.f32 %v393_v43 }
 0x13a   :  { %v1648_v45 = vpop.eup %1647 }
 0x13b   :  { %v395_v46 = vmul.f32 %v1648_v45, %v392_v44 }
 0x13d   :  { %v396_v47 = vmax.f32 %v395_v46, 0.0 }
 0x13e   :  { %1693 = dma.done.wait [#allocation8], 1024 }
 0x13f   :  { %1694 = vsyncadd [#allocation8], 4294966272  ;;  %v1728_v48 = vmov 0   ;;  %v402_v49 = vld [vmem:[#allocation2 + $0x8] sm:$0xff]  ;;  %v401_v50 = vld [vmem:[#allocation2] sm:$0xff]  ;;  %v409_v57 = vpack.c.bf16 %v396_v47, %v396_v47 }
 0x140   :  { %445 = vmatprep.mubr.bf16.mxu1 %v1728_v48  ;;  %v404_v51 = vld [vmem:[#allocation2 + $0x18] sm:$0xff]  ;;  %413 = vmatprep.subr.bf16.mxu1 %v402_v49  ;;  %v403_v52 = vld [vmem:[#allocation2 + $0x10] sm:$0xff]  ;;  %v406_v53 = vld [vmem:[#allocation2 + $0x28] sm:$0xff] }
 0x141   :  { %414 = vmatpush1.bf16.msra.mxu1 %v401_v50  ;;  %v405_v54 = vld [vmem:[#allocation2 + $0x20] sm:$0xff]  ;;  %v408_v55 = vld [vmem:[#allocation2 + $0x38] sm:$0xff]  ;;  %v407_v56 = vld [vmem:[#allocation2 + $0x30] sm:$0xff] }
 0x142   :  { %415 = vmatprep.subr.bf16.mxu1 %v404_v51 }
 0x145   :  { %416 = vmatpush1.bf16.msra.mxu1 %v403_v52 }
 0x146   :  { %417 = vmatprep.subr.bf16.mxu1 %v406_v53 }
 0x149   :  { %418 = vmatpush1.bf16.msra.mxu1 %v405_v54 }
 0x14a   :  { %419 = vmatprep.subr.bf16.mxu1 %v408_v55 }
 0x14d   :  { %420 = vmatpush1.bf16.msra.mxu1 %v407_v56 }
 0x150   :  { %1564 = vmatmul.mubr.msk.bf16.vlgmr.msra.gmra.mrb[4].mxu1 %vm371_vm3, %v409_v57 }
 0x223   :  { %v447_v58 = vpop.f32.mrb[4].mxu1 }
 0x224   :  { %v454_v59 = vrot.slane %v447_v58, 4  ;;  %v466_v60 = vmul.f32 %v447_v58, %v447_v58  ;;  %v449_v61 = vpop.f32.mrb[5].mxu1 }
 0x225   :  { %v460_v62 = vrot.slane %v449_v61, 4  ;;  %v467_v63 = vmul.f32 %v449_v61, %v449_v61  ;;  %v451_v0 = vpop.f32.mrb[6].mxu1 }
 0x226   :  { %v455_v1 = vadd.f32 %v454_v59, %v447_v58  ;;  %v468_v2 = vrot.slane %v466_v60, 4  ;;  %v452_v3 = vpop.f32.mrb[7].mxu1 }
 0x227   :  { %v461_v4 = vadd.f32 %v460_v62, %v449_v61  ;;  %v474_v5 = vrot.slane %v467_v63, 4 }
 0x228   :  { %v456_v6 = vrot.slane %v455_v1, 2  ;;  %v469_v7 = vadd.f32 %v468_v2, %v466_v60 }
 0x229   :  { %v462_v8 = vrot.slane %v461_v4, 2  ;;  %v475_v9 = vadd.f32 %v474_v5, %v467_v63 }
 0x22a   :  { %v457_v10 = vadd.f32 %v456_v6, %v455_v1  ;;  %v470_v11 = vrot.slane %v469_v7, 2 }
 0x22b   :  { %v463_v12 = vadd.f32 %v462_v8, %v461_v4  ;;  %v476_v13 = vrot.slane %v475_v9, 2 }
 0x22c   :  { %v458_v14 = vrot.slane %v457_v10, 1  ;;  %v471_v15 = vadd.f32 %v470_v11, %v469_v7 }
 0x22d   :  { %v464_v16 = vrot.slane %v463_v12, 1  ;;  %v477_v17 = vadd.f32 %v476_v13, %v475_v9 }
 0x22e   :  { %v459_v18 = vadd.f32 %v458_v14, %v457_v10  ;;  %v472_v19 = vrot.slane %v471_v15, 1 }
 0x22f   :  { %v465_v20 = vadd.f32 %v464_v16, %v463_v12  ;;  %v478_v21 = vrot.slane %v477_v17, 1 }
 0x230   :  { %v473_v22 = vadd.f32 %v472_v19, %v471_v15  ;;  %v480_v23 = vmul.f32 0.125, %v459_v18 }
 0x231   :  { %v479_v24 = vadd.f32 %v478_v21, %v477_v17  ;;  %v481_v25 = vmul.f32 0.125, %v465_v20 }
 0x232   :  { %v482_v26 = vmul.f32 0.125, %v473_v22  ;;  %v484_v27 = vmul.f32 %v480_v23, %v480_v23  ;;  %v490_v36 = vsub.f32 %v447_v58, %v480_v23 }
 0x233   :  { %v483_v28 = vmul.f32 0.125, %v479_v24  ;;  %v485_v29 = vmul.f32 %v481_v25, %v481_v25  ;;  %v491_v38 = vsub.f32 %v449_v61, %v481_v25 }
 0x234   :  { %v486_v30 = vsub.f32 %v482_v26, %v484_v27 }
 0x235   :  { %v487_v31 = vsub.f32 %v483_v28, %v485_v29 }
 0x236   :  { %v488_v32 = vmax.f32 %v486_v30, 0.0 }
 0x237   :  { %v489_v33 = vmax.f32 %v487_v31, 0.0 }
 0x238   :  { %v492_v34 = vadd.f32 1e-05, %v488_v32 }
 0x239   :  { %v493_v35 = vadd.f32 1e-05, %v489_v33 }
 0x23a   :  { %1649 = vrsqrt.f32 %v492_v34 }
 0x23b   :  { %1651 = vrsqrt.f32 %v493_v35 }
 0x244   :  { %v1650_v37 = vpop.eup %1649 }
 0x245   :  { %v1652_v39 = vpop.eup %1651  ;;  %v1900_v40 = vmul.f32 %v1650_v37, %v490_v36 }
 0x246   :  { %v497_v41 = vmul.f32 %v1652_v39, %v491_v38 }
 0x247   :  { %v498_v42 = vmax.f32 %v1900_v40, 0.0 }
 0x248   :  { %v499_v43 = vmax.f32 %v497_v41, 0.0 }
 0x249   :  { %1695 = dma.done.wait [#allocation8 + $0x1], 4096 }
 0x24a   :  { %1696 = vsyncadd [#allocation8 + $0x1], 4294963200  ;;  %v537_v44 = vpack.c.bf16 %v499_v43, %v499_v43  ;;  %v505_v45 = vld [vmem:[#allocation3 + $0x8] sm:$0xff]  ;;  %v504_v46 = vld [vmem:[#allocation3] sm:$0xff]  ;;  %v536_v13 = vpack.c.bf16 %v498_v42, %v498_v42 }
 0x24b   :  { %v507_v47 = vld [vmem:[#allocation3 + $0x18] sm:$0xff]  ;;  %538 = vmatprep.subr.bf16.mxu0 %v505_v45  ;;  %v506_v48 = vld [vmem:[#allocation3 + $0x10] sm:$0xff]  ;;  %v509_v49 = vld [vmem:[#allocation3 + $0x28] sm:$0xff] }
 0x24c   :  { %570 = vmatprep.mubr.bf16.mxu0 %v537_v44  ;;  %539 = vmatpush1.bf16.msra.mxu0 %v504_v46  ;;  %v508_v50 = vld [vmem:[#allocation3 + $0x20] sm:$0xff]  ;;  %v511_v51 = vld [vmem:[#allocation3 + $0x38] sm:$0xff]  ;;  %v510_v52 = vld [vmem:[#allocation3 + $0x30] sm:$0xff] }
 0x24d   :  { %540 = vmatprep.subr.bf16.mxu0 %v507_v47  ;;  %v513_v53 = vld [vmem:[#allocation3 + $0x48] sm:$0xff]  ;;  %v512_v54 = vld [vmem:[#allocation3 + $0x40] sm:$0xff]  ;;  %v515_v55 = vld [vmem:[#allocation3 + $0x58] sm:$0xff] }
 0x24e   :  { %v514_v56 = vld [vmem:[#allocation3 + $0x50] sm:$0xff]  ;;  %v517_v57 = vld [vmem:[#allocation3 + $0x68] sm:$0xff]  ;;  %v516_v58 = vld [vmem:[#allocation3 + $0x60] sm:$0xff] }
 0x24f   :  { %v519_v59 = vld [vmem:[#allocation3 + $0x78] sm:$0xff]  ;;  %v518_v60 = vld [vmem:[#allocation3 + $0x70] sm:$0xff]  ;;  %v521_v61 = vld [vmem:[#allocation3 + $0x88] sm:$0xff] }
 0x250   :  { %541 = vmatpush1.bf16.msra.mxu0 %v506_v48  ;;  %v520_v62 = vld [vmem:[#allocation3 + $0x80] sm:$0xff]  ;;  %v523_v63 = vld [vmem:[#allocation3 + $0x98] sm:$0xff]  ;;  %v522_v0 = vld [vmem:[#allocation3 + $0x90] sm:$0xff] }
 0x251   :  { %542 = vmatprep.subr.bf16.mxu0 %v509_v49  ;;  %v525_v1 = vld [vmem:[#allocation3 + $0xa8] sm:$0xff]  ;;  %v524_v2 = vld [vmem:[#allocation3 + $0xa0] sm:$0xff]  ;;  %v527_v3 = vld [vmem:[#allocation3 + $0xb8] sm:$0xff] }
 0x252   :  { %v526_v4 = vld [vmem:[#allocation3 + $0xb0] sm:$0xff]  ;;  %v529_v5 = vld [vmem:[#allocation3 + $0xc8] sm:$0xff]  ;;  %v528_v6 = vld [vmem:[#allocation3 + $0xc0] sm:$0xff] }
 0x253   :  { %v531_v7 = vld [vmem:[#allocation3 + $0xd8] sm:$0xff]  ;;  %v530_v8 = vld [vmem:[#allocation3 + $0xd0] sm:$0xff]  ;;  %v533_v9 = vld [vmem:[#allocation3 + $0xe8] sm:$0xff] }
 0x254   :  { %543 = vmatpush1.bf16.msra.mxu0 %v508_v50  ;;  %v532_v10 = vld [vmem:[#allocation3 + $0xe0] sm:$0xff]  ;;  %v535_v11 = vld [vmem:[#allocation3 + $0xf8] sm:$0xff]  ;;  %v534_v12 = vld [vmem:[#allocation3 + $0xf0] sm:$0xff] }
 0x255   :  { %544 = vmatprep.subr.bf16.mxu0 %v511_v51 }
 0x258   :  { %545 = vmatpush1.bf16.msra.mxu0 %v510_v52 }
 0x259   :  { %546 = vmatprep.subr.bf16.mxu0 %v513_v53 }
 0x25c   :  { %547 = vmatpush1.bf16.msra.mxu0 %v512_v54 }
 0x25d   :  { %548 = vmatprep.subr.bf16.mxu0 %v515_v55 }
 0x260   :  { %549 = vmatpush1.bf16.msra.mxu0 %v514_v56 }
 0x261   :  { %550 = vmatprep.subr.bf16.mxu0 %v517_v57 }
 0x264   :  { %551 = vmatpush1.bf16.msra.mxu0 %v516_v58 }
 0x265   :  { %552 = vmatprep.subr.bf16.mxu0 %v519_v59 }
 0x268   :  { %553 = vmatpush1.bf16.msra.mxu0 %v518_v60 }
 0x269   :  { %554 = vmatprep.subr.bf16.mxu0 %v521_v61 }
 0x26c   :  { %555 = vmatpush1.bf16.msra.mxu0 %v520_v62 }
 0x26d   :  { %556 = vmatprep.subr.bf16.mxu0 %v523_v63 }
 0x270   :  { %557 = vmatpush1.bf16.msra.mxu0 %v522_v0 }
 0x271   :  { %558 = vmatprep.subr.bf16.mxu0 %v525_v1 }
 0x274   :  { %559 = vmatpush1.bf16.msra.mxu0 %v524_v2 }
 0x275   :  { %560 = vmatprep.subr.bf16.mxu0 %v527_v3 }
 0x278   :  { %561 = vmatpush1.bf16.msra.mxu0 %v526_v4 }
 0x279   :  { %562 = vmatprep.subr.bf16.mxu0 %v529_v5 }
 0x27c   :  { %563 = vmatpush1.bf16.msra.mxu0 %v528_v6 }
 0x27d   :  { %564 = vmatprep.subr.bf16.mxu0 %v531_v7 }
 0x280   :  { %565 = vmatpush1.bf16.msra.mxu0 %v530_v8 }
 0x281   :  { %566 = vmatprep.subr.bf16.mxu0 %v533_v9 }
 0x284   :  { %567 = vmatpush1.bf16.msra.mxu0 %v532_v10 }
 0x285   :  { %568 = vmatprep.subr.bf16.mxu0 %v535_v11 }
 0x288   :  { %569 = vmatpush1.bf16.msra.mxu0 %v534_v12 }
 0x28b   :  { %571 = vmatmul.mubr.bf16.vlgmr.msra.gmra.mrb[0].mxu0 %v536_v13 }
 0x35e   :  { %v572_v14 = vpop.f32.mrb[0].mxu0 }
 0x35f   :  { %v579_v15 = vrot.slane %v572_v14, 4  ;;  %v591_v16 = vmul.f32 %v572_v14, %v572_v14  ;;  %v574_v17 = vpop.f32.mrb[1].mxu0 }
 0x360   :  { %v585_v18 = vrot.slane %v574_v17, 4  ;;  %v592_v19 = vmul.f32 %v574_v17, %v574_v17  ;;  %v576_v20 = vpop.f32.mrb[2].mxu0 }
 0x361   :  { %v580_v21 = vadd.f32 %v579_v15, %v572_v14  ;;  %v593_v22 = vrot.slane %v591_v16, 4  ;;  %v577_v23 = vpop.f32.mrb[3].mxu0 }
 0x362   :  { %v586_v24 = vadd.f32 %v585_v18, %v574_v17  ;;  %v599_v25 = vrot.slane %v592_v19, 4 }
 0x363   :  { %v581_v26 = vrot.slane %v580_v21, 2  ;;  %v594_v27 = vadd.f32 %v593_v22, %v591_v16 }
 0x364   :  { %v587_v28 = vrot.slane %v586_v24, 2  ;;  %v600_v29 = vadd.f32 %v599_v25, %v592_v19 }
 0x365   :  { %v582_v30 = vadd.f32 %v581_v26, %v580_v21  ;;  %v595_v31 = vrot.slane %v594_v27, 2 }
 0x366   :  { %v588_v32 = vadd.f32 %v587_v28, %v586_v24  ;;  %v601_v33 = vrot.slane %v600_v29, 2 }
 0x367   :  { %v583_v34 = vrot.slane %v582_v30, 1  ;;  %v596_v35 = vadd.f32 %v595_v31, %v594_v27 }
 0x368   :  { %v589_v36 = vrot.slane %v588_v32, 1  ;;  %v602_v37 = vadd.f32 %v601_v33, %v600_v29 }
 0x369   :  { %v584_v38 = vadd.f32 %v583_v34, %v582_v30  ;;  %v597_v39 = vrot.slane %v596_v35, 1 }
 0x36a   :  { %v590_v40 = vadd.f32 %v589_v36, %v588_v32  ;;  %v603_v41 = vrot.slane %v602_v37, 1 }
 0x36b   :  { %v598_v42 = vadd.f32 %v597_v39, %v596_v35  ;;  %v605_v43 = vmul.f32 0.125, %v584_v38 }
 0x36c   :  { %v604_v44 = vadd.f32 %v603_v41, %v602_v37  ;;  %v606_v45 = vmul.f32 0.125, %v590_v40 }
 0x36d   :  { %v607_v46 = vmul.f32 0.125, %v598_v42  ;;  %v609_v47 = vmul.f32 %v605_v43, %v605_v43  ;;  %v615_v56 = vsub.f32 %v572_v14, %v605_v43 }
 0x36e   :  { %v608_v48 = vmul.f32 0.125, %v604_v44  ;;  %v610_v49 = vmul.f32 %v606_v45, %v606_v45  ;;  %v616_v58 = vsub.f32 %v574_v17, %v606_v45 }
 0x36f   :  { %v611_v50 = vsub.f32 %v607_v46, %v609_v47 }
 0x370   :  { %v612_v51 = vsub.f32 %v608_v48, %v610_v49 }
 0x371   :  { %v613_v52 = vmax.f32 %v611_v50, 0.0 }
 0x372   :  { %v614_v53 = vmax.f32 %v612_v51, 0.0 }
 0x373   :  { %v617_v54 = vadd.f32 1e-05, %v613_v52 }
 0x374   :  { %v618_v55 = vadd.f32 1e-05, %v614_v53 }
 0x375   :  { %1653 = vrsqrt.f32 %v617_v54 }
 0x376   :  { %1655 = vrsqrt.f32 %v618_v55 }
 0x37f   :  { %v1654_v57 = vpop.eup %1653 }
 0x380   :  { %v1656_v59 = vpop.eup %1655  ;;  %v1906_v60 = vmul.f32 %v1654_v57, %v615_v56 }
 0x381   :  { %v622_v61 = vmul.f32 %v1656_v59, %v616_v58 }
 0x382   :  { %v623_v62 = vmax.f32 %v1906_v60, 0.0 }
 0x383   :  { %v624_v63 = vmax.f32 %v622_v61, 0.0 }
 0x384   :  { %1697 = dma.done.wait [#allocation8 + $0x2], 8192 }
 0x385   :  { %1698 = vsyncadd [#allocation8 + $0x2], 4294959104  ;;  %v693_v0 = vpack.c.bf16 %v624_v63, %v624_v63  ;;  %v629_v1 = vld [vmem:[#allocation4 + $0x8] sm:$0xff]  ;;  %v631_v2 = vld [vmem:[#allocation4 + $0x18] sm:$0xff] }
 0x386   :  { %v628_v3 = vld [vmem:[#allocation4] sm:$0xff]  ;;  %694 = vmatprep.subr.bf16.mxu1 %v629_v1  ;;  %735 = vmatprep.subr.bf16.mxu0 %v631_v2  ;;  %v630_v4 = vld [vmem:[#allocation4 + $0x10] sm:$0xff]  ;;  %v633_v5 = vld [vmem:[#allocation4 + $0x28] sm:$0xff] }
 0x387   :  { %726 = vmatprep.mubr.bf16.mxu1 %v693_v0  ;;  %767 = vmatprep.mubr.bf16.mxu0 %v693_v0  ;;  %v635_v6 = vld [vmem:[#allocation4 + $0x38] sm:$0xff]  ;;  %v632_v7 = vld [vmem:[#allocation4 + $0x20] sm:$0xff]  ;;  %v634_v8 = vld [vmem:[#allocation4 + $0x30] sm:$0xff] }
 0x388   :  { %695 = vmatpush1.bf16.msra.mxu1 %v628_v3  ;;  %736 = vmatpush1.bf16.msra.mxu0 %v630_v4  ;;  %v637_v9 = vld [vmem:[#allocation4 + $0x48] sm:$0xff]  ;;  %v639_v10 = vld [vmem:[#allocation4 + $0x58] sm:$0xff]  ;;  %v636_v11 = vld [vmem:[#allocation4 + $0x40] sm:$0xff]  ;;  %v692_v3 = vpack.c.bf16 %v623_v62, %v623_v62 }
 0x389   :  { %696 = vmatprep.subr.bf16.mxu1 %v633_v5  ;;  %737 = vmatprep.subr.bf16.mxu0 %v635_v6  ;;  %v638_v12 = vld [vmem:[#allocation4 + $0x50] sm:$0xff]  ;;  %v641_v13 = vld [vmem:[#allocation4 + $0x68] sm:$0xff]  ;;  %v643_v14 = vld [vmem:[#allocation4 + $0x78] sm:$0xff] }
 0x38a   :  { %v640_v15 = vld [vmem:[#allocation4 + $0x60] sm:$0xff]  ;;  %v642_v16 = vld [vmem:[#allocation4 + $0x70] sm:$0xff]  ;;  %v645_v17 = vld [vmem:[#allocation4 + $0x88] sm:$0xff] }
 0x38b   :  { %v647_v18 = vld [vmem:[#allocation4 + $0x98] sm:$0xff]  ;;  %v644_v19 = vld [vmem:[#allocation4 + $0x80] sm:$0xff]  ;;  %v646_v20 = vld [vmem:[#allocation4 + $0x90] sm:$0xff] }
 0x38c   :  { %697 = vmatpush1.bf16.msra.mxu1 %v632_v7  ;;  %738 = vmatpush1.bf16.msra.mxu0 %v634_v8  ;;  %v649_v21 = vld [vmem:[#allocation4 + $0xa8] sm:$0xff]  ;;  %v651_v22 = vld [vmem:[#allocation4 + $0xb8] sm:$0xff]  ;;  %v648_v23 = vld [vmem:[#allocation4 + $0xa0] sm:$0xff] }
 0x38d   :  { %698 = vmatprep.subr.bf16.mxu1 %v637_v9  ;;  %739 = vmatprep.subr.bf16.mxu0 %v639_v10  ;;  %v650_v24 = vld [vmem:[#allocation4 + $0xb0] sm:$0xff]  ;;  %v653_v25 = vld [vmem:[#allocation4 + $0xc8] sm:$0xff]  ;;  %v655_v26 = vld [vmem:[#allocation4 + $0xd8] sm:$0xff] }
 0x38e   :  { %v652_v27 = vld [vmem:[#allocation4 + $0xc0] sm:$0xff]  ;;  %v654_v28 = vld [vmem:[#allocation4 + $0xd0] sm:$0xff]  ;;  %v657_v29 = vld [vmem:[#allocation4 + $0xe8] sm:$0xff] }
 0x38f   :  { %v659_v30 = vld [vmem:[#allocation4 + $0xf8] sm:$0xff]  ;;  %v656_v31 = vld [vmem:[#allocation4 + $0xe0] sm:$0xff]  ;;  %v658_v32 = vld [vmem:[#allocation4 + $0xf0] sm:$0xff] }
 0x390   :  { %699 = vmatpush1.bf16.msra.mxu1 %v636_v11  ;;  %740 = vmatpush1.bf16.msra.mxu0 %v638_v12  ;;  %v661_v33 = vld [vmem:[#allocation4 + $0x108] sm:$0xff]  ;;  %v663_v34 = vld [vmem:[#allocation4 + $0x118] sm:$0xff]  ;;  %v660_v35 = vld [vmem:[#allocation4 + $0x100] sm:$0xff] }
 0x391   :  { %700 = vmatprep.subr.bf16.mxu1 %v641_v13  ;;  %741 = vmatprep.subr.bf16.mxu0 %v643_v14  ;;  %v662_v36 = vld [vmem:[#allocation4 + $0x110] sm:$0xff]  ;;  %v665_v37 = vld [vmem:[#allocation4 + $0x128] sm:$0xff]  ;;  %v667_v38 = vld [vmem:[#allocation4 + $0x138] sm:$0xff] }
 0x392   :  { %v664_v39 = vld [vmem:[#allocation4 + $0x120] sm:$0xff]  ;;  %v666_v40 = vld [vmem:[#allocation4 + $0x130] sm:$0xff]  ;;  %v669_v41 = vld [vmem:[#allocation4 + $0x148] sm:$0xff] }
 0x393   :  { %v671_v42 = vld [vmem:[#allocation4 + $0x158] sm:$0xff]  ;;  %v668_v43 = vld [vmem:[#allocation4 + $0x140] sm:$0xff]  ;;  %v670_v44 = vld [vmem:[#allocation4 + $0x150] sm:$0xff] }
 0x394   :  { %701 = vmatpush1.bf16.msra.mxu1 %v640_v15  ;;  %742 = vmatpush1.bf16.msra.mxu0 %v642_v16  ;;  %v673_v45 = vld [vmem:[#allocation4 + $0x168] sm:$0xff]  ;;  %v675_v46 = vld [vmem:[#allocation4 + $0x178] sm:$0xff]  ;;  %v672_v47 = vld [vmem:[#allocation4 + $0x160] sm:$0xff] }
 0x395   :  { %702 = vmatprep.subr.bf16.mxu1 %v645_v17  ;;  %743 = vmatprep.subr.bf16.mxu0 %v647_v18  ;;  %v674_v48 = vld [vmem:[#allocation4 + $0x170] sm:$0xff]  ;;  %v677_v49 = vld [vmem:[#allocation4 + $0x188] sm:$0xff]  ;;  %v679_v50 = vld [vmem:[#allocation4 + $0x198] sm:$0xff] }
 0x396   :  { %v676_v51 = vld [vmem:[#allocation4 + $0x180] sm:$0xff]  ;;  %v678_v52 = vld [vmem:[#allocation4 + $0x190] sm:$0xff]  ;;  %v681_v53 = vld [vmem:[#allocation4 + $0x1a8] sm:$0xff] }
 0x397   :  { %v683_v54 = vld [vmem:[#allocation4 + $0x1b8] sm:$0xff]  ;;  %v680_v55 = vld [vmem:[#allocation4 + $0x1a0] sm:$0xff]  ;;  %v682_v56 = vld [vmem:[#allocation4 + $0x1b0] sm:$0xff] }
 0x398   :  { %703 = vmatpush1.bf16.msra.mxu1 %v644_v19  ;;  %744 = vmatpush1.bf16.msra.mxu0 %v646_v20  ;;  %v685_v57 = vld [vmem:[#allocation4 + $0x1c8] sm:$0xff]  ;;  %v687_v58 = vld [vmem:[#allocation4 + $0x1d8] sm:$0xff]  ;;  %v684_v59 = vld [vmem:[#allocation4 + $0x1c0] sm:$0xff] }
 0x399   :  { %704 = vmatprep.subr.bf16.mxu1 %v649_v21  ;;  %745 = vmatprep.subr.bf16.mxu0 %v651_v22  ;;  %v686_v61 = vld [vmem:[#allocation4 + $0x1d0] sm:$0xff]  ;;  %v689_v63 = vld [vmem:[#allocation4 + $0x1e8] sm:$0xff]  ;;  %v691_v0 = vld [vmem:[#allocation4 + $0x1f8] sm:$0xff] }
 0x39a   :  { %v688_v1 = vld [vmem:[#allocation4 + $0x1e0] sm:$0xff]  ;;  %v690_v2 = vld [vmem:[#allocation4 + $0x1f0] sm:$0xff] }
 0x39c   :  { %705 = vmatpush1.bf16.msra.mxu1 %v648_v23  ;;  %746 = vmatpush1.bf16.msra.mxu0 %v650_v24 }
 0x39d   :  { %706 = vmatprep.subr.bf16.mxu1 %v653_v25  ;;  %747 = vmatprep.subr.bf16.mxu0 %v655_v26 }
 0x3a0   :  { %707 = vmatpush1.bf16.msra.mxu1 %v652_v27  ;;  %748 = vmatpush1.bf16.msra.mxu0 %v654_v28 }
 0x3a1   :  { %708 = vmatprep.subr.bf16.mxu1 %v657_v29  ;;  %749 = vmatprep.subr.bf16.mxu0 %v659_v30 }
 0x3a4   :  { %709 = vmatpush1.bf16.msra.mxu1 %v656_v31  ;;  %750 = vmatpush1.bf16.msra.mxu0 %v658_v32 }
 0x3a5   :  { %710 = vmatprep.subr.bf16.mxu1 %v661_v33  ;;  %751 = vmatprep.subr.bf16.mxu0 %v663_v34 }
 0x3a8   :  { %711 = vmatpush1.bf16.msra.mxu1 %v660_v35  ;;  %752 = vmatpush1.bf16.msra.mxu0 %v662_v36 }
 0x3a9   :  { %712 = vmatprep.subr.bf16.mxu1 %v665_v37  ;;  %753 = vmatprep.subr.bf16.mxu0 %v667_v38 }
 0x3ac   :  { %713 = vmatpush1.bf16.msra.mxu1 %v664_v39  ;;  %754 = vmatpush1.bf16.msra.mxu0 %v666_v40 }
 0x3ad   :  { %714 = vmatprep.subr.bf16.mxu1 %v669_v41  ;;  %755 = vmatprep.subr.bf16.mxu0 %v671_v42 }
 0x3b0   :  { %715 = vmatpush1.bf16.msra.mxu1 %v668_v43  ;;  %756 = vmatpush1.bf16.msra.mxu0 %v670_v44 }
 0x3b1   :  { %716 = vmatprep.subr.bf16.mxu1 %v673_v45  ;;  %757 = vmatprep.subr.bf16.mxu0 %v675_v46 }
 0x3b4   :  { %717 = vmatpush1.bf16.msra.mxu1 %v672_v47  ;;  %758 = vmatpush1.bf16.msra.mxu0 %v674_v48 }
 0x3b5   :  { %718 = vmatprep.subr.bf16.mxu1 %v677_v49  ;;  %759 = vmatprep.subr.bf16.mxu0 %v679_v50 }
 0x3b8   :  { %719 = vmatpush1.bf16.msra.mxu1 %v676_v51  ;;  %760 = vmatpush1.bf16.msra.mxu0 %v678_v52 }
 0x3b9   :  { %720 = vmatprep.subr.bf16.mxu1 %v681_v53  ;;  %761 = vmatprep.subr.bf16.mxu0 %v683_v54 }
 0x3bc   :  { %721 = vmatpush1.bf16.msra.mxu1 %v680_v55  ;;  %762 = vmatpush1.bf16.msra.mxu0 %v682_v56 }
 0x3bd   :  { %722 = vmatprep.subr.bf16.mxu1 %v685_v57  ;;  %763 = vmatprep.subr.bf16.mxu0 %v687_v58 }
 0x3c0   :  { %723 = vmatpush1.bf16.msra.mxu1 %v684_v59  ;;  %764 = vmatpush1.bf16.msra.mxu0 %v686_v61 }
 0x3c1   :  { %724 = vmatprep.subr.bf16.mxu1 %v689_v63  ;;  %765 = vmatprep.subr.bf16.mxu0 %v691_v0 }
 0x3c4   :  { %725 = vmatpush1.bf16.msra.mxu1 %v688_v1  ;;  %766 = vmatpush1.bf16.msra.mxu0 %v690_v2 }
 0x3c7   :  { %727 = vmatmul.mubr.bf16.vlgmr.msra.gmra.mrb[8].mxu1 %v692_v3  ;;  %768 = vmatmul.mubr.bf16.vlgmr.msra.gmra.mrb[4].mxu0 %v692_v3 }
 0x49a   :  { %v1912_v4 = vpop.f32.mrb[8].mxu1  ;;  %v1914_v5 = vpop.f32.mrb[4].mxu0 }
 0x49b   :  { %v776_v6 = vrot.slane %v1912_v4, 4  ;;  %v800_v7 = vmul.f32 %v1912_v4, %v1912_v4  ;;  %v788_v8 = vrot.slane %v1914_v5, 4  ;;  %v802_v60 = vmul.f32 %v1914_v5, %v1914_v5  ;;  %v1922_v9 = vpop.f32.mrb[9].mxu1  ;;  %v1924_v62 = vpop.f32.mrb[5].mxu0 }
 0x49c   :  { %v782_v10 = vrot.slane %v1922_v9, 4  ;;  %v801_v11 = vmul.f32 %v1922_v9, %v1922_v9  ;;  %v794_v12 = vrot.slane %v1924_v62, 4  ;;  %v803_v13 = vmul.f32 %v1924_v62, %v1924_v62  ;;  %v732_v14 = vpop.f32.mrb[10].mxu1  ;;  %v773_v15 = vpop.f32.mrb[6].mxu0 }
 0x49d   :  { %v777_v16 = vadd.f32 %v776_v6, %v1912_v4  ;;  %v804_v17 = vrot.slane %v800_v7, 4  ;;  %v789_v18 = vadd.f32 %v788_v8, %v1914_v5  ;;  %v816_v19 = vrot.slane %v802_v60, 4  ;;  %v733_v20 = vpop.f32.mrb[11].mxu1  ;;  %v774_v21 = vpop.f32.mrb[7].mxu0 }
 0x49e   :  { %v783_v22 = vadd.f32 %v782_v10, %v1922_v9  ;;  %v810_v23 = vrot.slane %v801_v11, 4  ;;  %v795_v24 = vadd.f32 %v794_v12, %v1924_v62  ;;  %v822_v25 = vrot.slane %v803_v13, 4 }
 0x49f   :  { %v778_v26 = vrot.slane %v777_v16, 2  ;;  %v805_v27 = vadd.f32 %v804_v17, %v800_v7  ;;  %v790_v28 = vrot.slane %v789_v18, 2  ;;  %v817_v29 = vadd.f32 %v816_v19, %v802_v60 }
 0x4a0   :  { %v784_v30 = vrot.slane %v783_v22, 2  ;;  %v811_v31 = vadd.f32 %v810_v23, %v801_v11  ;;  %v796_v32 = vrot.slane %v795_v24, 2  ;;  %v823_v33 = vadd.f32 %v822_v25, %v803_v13 }
 0x4a1   :  { %v779_v34 = vadd.f32 %v778_v26, %v777_v16  ;;  %v806_v35 = vrot.slane %v805_v27, 2  ;;  %v791_v36 = vadd.f32 %v790_v28, %v789_v18  ;;  %v818_v37 = vrot.slane %v817_v29, 2 }
 0x4a2   :  { %v785_v38 = vadd.f32 %v784_v30, %v783_v22  ;;  %v812_v39 = vrot.slane %v811_v31, 2  ;;  %v797_v40 = vadd.f32 %v796_v32, %v795_v24  ;;  %v824_v41 = vrot.slane %v823_v33, 2 }
 0x4a3   :  { %v780_v42 = vrot.slane %v779_v34, 1  ;;  %v807_v43 = vadd.f32 %v806_v35, %v805_v27  ;;  %v792_v44 = vrot.slane %v791_v36, 1  ;;  %v819_v45 = vadd.f32 %v818_v37, %v817_v29 }
 0x4a4   :  { %v786_v46 = vrot.slane %v785_v38, 1  ;;  %v813_v47 = vadd.f32 %v812_v39, %v811_v31  ;;  %v798_v48 = vrot.slane %v797_v40, 1  ;;  %v825_v49 = vadd.f32 %v824_v41, %v823_v33 }
 0x4a5   :  { %v781_v50 = vadd.f32 %v780_v42, %v779_v34  ;;  %v808_v51 = vrot.slane %v807_v43, 1  ;;  %v793_v52 = vadd.f32 %v792_v44, %v791_v36  ;;  %v820_v53 = vrot.slane %v819_v45, 1 }
 0x4a6   :  { %v787_v54 = vadd.f32 %v786_v46, %v785_v38  ;;  %v814_v55 = vrot.slane %v813_v47, 1  ;;  %v799_v56 = vadd.f32 %v798_v48, %v797_v40  ;;  %v826_v57 = vrot.slane %v825_v49, 1 }
 0x4a7   :  { %v809_v58 = vadd.f32 %v808_v51, %v807_v43  ;;  %v828_v59 = vmul.f32 0.125, %v781_v50  ;;  %v821_v61 = vadd.f32 %v820_v53, %v819_v45  ;;  %v830_v63 = vmul.f32 0.125, %v793_v52 }
 0x4a8   :  { %v815_v0 = vadd.f32 %v814_v55, %v813_v47  ;;  %v829_v1 = vmul.f32 0.125, %v787_v54  ;;  %v827_v2 = vadd.f32 %v826_v57, %v825_v49  ;;  %v831_v3 = vmul.f32 0.125, %v799_v56 }
 0x4a9   :  { %v832_v6 = vmul.f32 0.125, %v809_v58  ;;  %v836_v7 = vmul.f32 %v828_v59, %v828_v59  ;;  %v834_v8 = vmul.f32 0.125, %v821_v61  ;;  %v838_v60 = vmul.f32 %v830_v63, %v830_v63 }
 0x4aa   :  { %v833_v10 = vmul.f32 0.125, %v815_v0  ;;  %v837_v11 = vmul.f32 %v829_v1, %v829_v1  ;;  %v835_v13 = vmul.f32 0.125, %v827_v2  ;;  %v839_v14 = vmul.f32 %v831_v3, %v831_v3 }
 0x4ab   :  { %v840_v12 = vsub.f32 %v832_v6, %v836_v7  ;;  %v842_v15 = vsub.f32 %v834_v8, %v838_v60  ;;  %v848_v26 = vsub.f32 %v1912_v4, %v828_v59  ;;  %v850_v28 = vsub.f32 %v1914_v5, %v830_v63 }
 0x4ac   :  { %v841_v16 = vsub.f32 %v833_v10, %v837_v11  ;;  %v843_v18 = vsub.f32 %v835_v13, %v839_v14  ;;  %v849_v31 = vsub.f32 %v1922_v9, %v829_v1  ;;  %v851_v34 = vsub.f32 %v1924_v62, %v831_v3 }
 0x4ad   :  { %v844_v17 = vmax.f32 %v840_v12, 0.0  ;;  %v846_v19 = vmax.f32 %v842_v15, 0.0 }
 0x4ae   :  { %v845_v20 = vmax.f32 %v841_v16, 0.0  ;;  %v847_v22 = vmax.f32 %v843_v18, 0.0 }
 0x4af   :  { %v852_v21 = vadd.f32 1e-05, %v844_v17  ;;  %v854_v23 = vadd.f32 1e-05, %v846_v19 }
 0x4b0   :  { %v853_v24 = vadd.f32 1e-05, %v845_v20  ;;  %v855_v25 = vadd.f32 1e-05, %v847_v22 }
 0x4b1   :  { %1657 = vrsqrt.f32 %v852_v21 }
 0x4b2   :  { %1659 = vrsqrt.f32 %v854_v23 }
 0x4b3   :  { %1661 = vrsqrt.f32 %v853_v24 }
 0x4b4   :  { %1663 = vrsqrt.f32 %v855_v25 }
 0x4bb   :  { %v1658_v27 = vpop.eup %1657 }
 0x4bc   :  { %v1660_v29 = vpop.eup %1659  ;;  %v1938_v30 = vmul.f32 %v1658_v27, %v848_v26 }
 0x4bd   :  { %v1662_v32 = vpop.eup %1661  ;;  %v1941_v33 = vmul.f32 %v1660_v29, %v850_v28 }
 0x4be   :  { %v1664_v35 = vpop.eup %1663  ;;  %v864_v36 = vmax.f32 %v1938_v30, 0.0  ;;  %v861_v37 = vmul.f32 %v1662_v32, %v849_v31 }
 0x4bf   :  { %v866_v38 = vmax.f32 %v1941_v33, 0.0  ;;  %v1946_v4 = vmul.f32 %v1664_v35, %v851_v34 }
 0x4c0   :  { %v865_v39 = vmax.f32 %v861_v37, 0.0 }
 0x4c1   :  { %v867_v5 = vmax.f32 %v1946_v4, 0.0 }
 0x4c2   :  { %1699 = dma.done.wait [#allocation8 + $0x3], 8192 }
 0x4c3   :  { %1700 = vsyncadd [#allocation8 + $0x3], 4294959104  ;;  %v937_v40 = vpack.c.bf16 %v865_v39, %v865_v39  ;;  %v873_v9 = vld [vmem:[#allocation5 + $0x8] sm:$0xff]  ;;  %v872_v41 = vld [vmem:[#allocation5] sm:$0xff]  ;;  %v936_v12 = vpack.c.bf16 %v864_v36, %v864_v36  ;;  %v939_v13 = vpack.c.bf16 %v867_v5, %v867_v5 }
 0x4c4   :  { %v875_v42 = vld [vmem:[#allocation5 + $0x18] sm:$0xff]  ;;  %940 = vmatprep.subr.bf16.mxu1 %v873_v9  ;;  %v874_v62 = vld [vmem:[#allocation5 + $0x10] sm:$0xff]  ;;  %v877_v43 = vld [vmem:[#allocation5 + $0x28] sm:$0xff] }
 0x4c5   :  { %972 = vmatprep.mubr.bf16.mxu1 %v937_v40  ;;  %941 = vmatpush1.bf16.msra.mxu1 %v872_v41  ;;  %v876_v44 = vld [vmem:[#allocation5 + $0x20] sm:$0xff]  ;;  %v879_v45 = vld [vmem:[#allocation5 + $0x38] sm:$0xff]  ;;  %v878_v46 = vld [vmem:[#allocation5 + $0x30] sm:$0xff] }
 0x4c6   :  { %942 = vmatprep.subr.bf16.mxu1 %v875_v42  ;;  %v881_v47 = vld [vmem:[#allocation5 + $0x48] sm:$0xff]  ;;  %v880_v48 = vld [vmem:[#allocation5 + $0x40] sm:$0xff]  ;;  %v883_v49 = vld [vmem:[#allocation5 + $0x58] sm:$0xff] }
 0x4c7   :  { %v882_v50 = vld [vmem:[#allocation5 + $0x50] sm:$0xff]  ;;  %v885_v51 = vld [vmem:[#allocation5 + $0x68] sm:$0xff]  ;;  %v884_v52 = vld [vmem:[#allocation5 + $0x60] sm:$0xff] }
 0x4c8   :  { %v887_v53 = vld [vmem:[#allocation5 + $0x78] sm:$0xff]  ;;  %v886_v54 = vld [vmem:[#allocation5 + $0x70] sm:$0xff]  ;;  %v889_v55 = vld [vmem:[#allocation5 + $0x88] sm:$0xff] }
 0x4c9   :  { %943 = vmatpush1.bf16.msra.mxu1 %v874_v62  ;;  %v888_v56 = vld [vmem:[#allocation5 + $0x80] sm:$0xff]  ;;  %v891_v57 = vld [vmem:[#allocation5 + $0x98] sm:$0xff]  ;;  %v890_v58 = vld [vmem:[#allocation5 + $0x90] sm:$0xff] }
 0x4ca   :  { %944 = vmatprep.subr.bf16.mxu1 %v877_v43  ;;  %v893_v59 = vld [vmem:[#allocation5 + $0xa8] sm:$0xff]  ;;  %v892_v61 = vld [vmem:[#allocation5 + $0xa0] sm:$0xff]  ;;  %v895_v63 = vld [vmem:[#allocation5 + $0xb8] sm:$0xff]  ;;  %v938_v43 = vpack.c.bf16 %v866_v38, %v866_v38 }
 0x4cb   :  { %v894_v0 = vld [vmem:[#allocation5 + $0xb0] sm:$0xff]  ;;  %v897_v1 = vld [vmem:[#allocation5 + $0xc8] sm:$0xff]  ;;  %v896_v2 = vld [vmem:[#allocation5 + $0xc0] sm:$0xff] }
 0x4cc   :  { %v899_v3 = vld [vmem:[#allocation5 + $0xd8] sm:$0xff]  ;;  %v898_v6 = vld [vmem:[#allocation5 + $0xd0] sm:$0xff]  ;;  %v901_v7 = vld [vmem:[#allocation5 + $0xe8] sm:$0xff] }
 0x4cd   :  { %945 = vmatpush1.bf16.msra.mxu1 %v876_v44  ;;  %v900_v8 = vld [vmem:[#allocation5 + $0xe0] sm:$0xff]  ;;  %v903_v60 = vld [vmem:[#allocation5 + $0xf8] sm:$0xff]  ;;  %v902_v10 = vld [vmem:[#allocation5 + $0xf0] sm:$0xff] }
 0x4ce   :  { %946 = vmatprep.subr.bf16.mxu1 %v879_v45  ;;  %v905_v11 = vld [vmem:[#allocation5 + $0x108] sm:$0xff]  ;;  %v904_v14 = vld [vmem:[#allocation5 + $0x100] sm:$0xff]  ;;  %v907_v15 = vld [vmem:[#allocation5 + $0x118] sm:$0xff] }
 0x4cf   :  { %v906_v16 = vld [vmem:[#allocation5 + $0x110] sm:$0xff]  ;;  %v909_v17 = vld [vmem:[#allocation5 + $0x128] sm:$0xff]  ;;  %v908_v18 = vld [vmem:[#allocation5 + $0x120] sm:$0xff] }
 0x4d0   :  { %v911_v19 = vld [vmem:[#allocation5 + $0x138] sm:$0xff]  ;;  %v910_v20 = vld [vmem:[#allocation5 + $0x130] sm:$0xff]  ;;  %v913_v21 = vld [vmem:[#allocation5 + $0x148] sm:$0xff] }
 0x4d1   :  { %947 = vmatpush1.bf16.msra.mxu1 %v878_v46  ;;  %v912_v22 = vld [vmem:[#allocation5 + $0x140] sm:$0xff]  ;;  %v915_v23 = vld [vmem:[#allocation5 + $0x158] sm:$0xff]  ;;  %v914_v24 = vld [vmem:[#allocation5 + $0x150] sm:$0xff] }
 0x4d2   :  { %948 = vmatprep.subr.bf16.mxu1 %v881_v47  ;;  %v917_v25 = vld [vmem:[#allocation5 + $0x168] sm:$0xff]  ;;  %v916_v26 = vld [vmem:[#allocation5 + $0x160] sm:$0xff]  ;;  %v919_v27 = vld [vmem:[#allocation5 + $0x178] sm:$0xff] }
 0x4d3   :  { %v918_v28 = vld [vmem:[#allocation5 + $0x170] sm:$0xff]  ;;  %v921_v29 = vld [vmem:[#allocation5 + $0x188] sm:$0xff]  ;;  %v920_v30 = vld [vmem:[#allocation5 + $0x180] sm:$0xff] }
 0x4d4   :  { %v923_v31 = vld [vmem:[#allocation5 + $0x198] sm:$0xff]  ;;  %v922_v32 = vld [vmem:[#allocation5 + $0x190] sm:$0xff]  ;;  %v925_v34 = vld [vmem:[#allocation5 + $0x1a8] sm:$0xff] }
 0x4d5   :  { %949 = vmatpush1.bf16.msra.mxu1 %v880_v48  ;;  %v924_v35 = vld [vmem:[#allocation5 + $0x1a0] sm:$0xff]  ;;  %v927_v36 = vld [vmem:[#allocation5 + $0x1b8] sm:$0xff]  ;;  %v926_v37 = vld [vmem:[#allocation5 + $0x1b0] sm:$0xff] }
 0x4d6   :  { %950 = vmatprep.subr.bf16.mxu1 %v883_v49  ;;  %v929_v4 = vld [vmem:[#allocation5 + $0x1c8] sm:$0xff]  ;;  %v928_v39 = vld [vmem:[#allocation5 + $0x1c0] sm:$0xff]  ;;  %v931_v5 = vld [vmem:[#allocation5 + $0x1d8] sm:$0xff] }
 0x4d7   :  { %v930_v40 = vld [vmem:[#allocation5 + $0x1d0] sm:$0xff]  ;;  %v933_v9 = vld [vmem:[#allocation5 + $0x1e8] sm:$0xff]  ;;  %v932_v41 = vld [vmem:[#allocation5 + $0x1e0] sm:$0xff] }
 0x4d8   :  { %v935_v42 = vld [vmem:[#allocation5 + $0x1f8] sm:$0xff]  ;;  %v934_v62 = vld [vmem:[#allocation5 + $0x1f0] sm:$0xff] }
 0x4d9   :  { %951 = vmatpush1.bf16.msra.mxu1 %v882_v50 }
 0x4da   :  { %952 = vmatprep.subr.bf16.mxu1 %v885_v51 }
 0x4dd   :  { %953 = vmatpush1.bf16.msra.mxu1 %v884_v52 }
 0x4de   :  { %954 = vmatprep.subr.bf16.mxu1 %v887_v53 }
 0x4e1   :  { %955 = vmatpush1.bf16.msra.mxu1 %v886_v54 }
 0x4e2   :  { %956 = vmatprep.subr.bf16.mxu1 %v889_v55 }
 0x4e5   :  { %957 = vmatpush1.bf16.msra.mxu1 %v888_v56 }
 0x4e6   :  { %958 = vmatprep.subr.bf16.mxu1 %v891_v57 }
 0x4e9   :  { %959 = vmatpush1.bf16.msra.mxu1 %v890_v58 }
 0x4ea   :  { %960 = vmatprep.subr.bf16.mxu1 %v893_v59 }
 0x4ed   :  { %961 = vmatpush1.bf16.msra.mxu1 %v892_v61 }
 0x4ee   :  { %962 = vmatprep.subr.bf16.mxu1 %v895_v63 }
 0x4f1   :  { %963 = vmatpush1.bf16.msra.mxu1 %v894_v0 }
 0x4f2   :  { %964 = vmatprep.subr.bf16.mxu1 %v897_v1 }
 0x4f5   :  { %965 = vmatpush1.bf16.msra.mxu1 %v896_v2 }
 0x4f6   :  { %966 = vmatprep.subr.bf16.mxu1 %v899_v3 }
 0x4f9   :  { %967 = vmatpush1.bf16.msra.mxu1 %v898_v6 }
 0x4fa   :  { %968 = vmatprep.subr.bf16.mxu1 %v901_v7 }
 0x4fd   :  { %969 = vmatpush1.bf16.msra.mxu1 %v900_v8 }
 0x4fe   :  { %970 = vmatprep.subr.bf16.mxu1 %v903_v60 }
 0x501   :  { %971 = vmatpush1.bf16.msra.mxu1 %v902_v10 }
 0x502   :  { %981 = vmatprep.subr.bf16.mxu1 %v905_v11 }
 0x504   :  { %973 = vmatmul.mubr.bf16.vlgmr.msra.gmra.mrb[12].mxu1 %v936_v12 }
 0x505   :  { %982 = vmatpush1.bf16.msra.mxu1 %v904_v14  ;;  %1013 = vmatprep.mubr.bf16.mxu1 %v939_v13 }
 0x506   :  { %983 = vmatprep.subr.bf16.mxu1 %v907_v15 }
 0x509   :  { %984 = vmatpush1.bf16.msra.mxu1 %v906_v16 }
 0x50a   :  { %985 = vmatprep.subr.bf16.mxu1 %v909_v17 }
 0x50d   :  { %986 = vmatpush1.bf16.msra.mxu1 %v908_v18 }
 0x50e   :  { %987 = vmatprep.subr.bf16.mxu1 %v911_v19 }
 0x511   :  { %988 = vmatpush1.bf16.msra.mxu1 %v910_v20 }
 0x512   :  { %989 = vmatprep.subr.bf16.mxu1 %v913_v21 }
 0x515   :  { %990 = vmatpush1.bf16.msra.mxu1 %v912_v22 }
 0x516   :  { %991 = vmatprep.subr.bf16.mxu1 %v915_v23 }
 0x519   :  { %992 = vmatpush1.bf16.msra.mxu1 %v914_v24 }
 0x51a   :  { %993 = vmatprep.subr.bf16.mxu1 %v917_v25 }
 0x51d   :  { %994 = vmatpush1.bf16.msra.mxu1 %v916_v26 }
 0x51e   :  { %995 = vmatprep.subr.bf16.mxu1 %v919_v27 }
 0x521   :  { %996 = vmatpush1.bf16.msra.mxu1 %v918_v28 }
 0x522   :  { %997 = vmatprep.subr.bf16.mxu1 %v921_v29 }
 0x525   :  { %998 = vmatpush1.bf16.msra.mxu1 %v920_v30 }
 0x526   :  { %999 = vmatprep.subr.bf16.mxu1 %v923_v31 }
 0x529   :  { %1000 = vmatpush1.bf16.msra.mxu1 %v922_v32 }
 0x52a   :  { %1001 = vmatprep.subr.bf16.mxu1 %v925_v34 }
 0x52d   :  { %1002 = vmatpush1.bf16.msra.mxu1 %v924_v35 }
 0x52e   :  { %1003 = vmatprep.subr.bf16.mxu1 %v927_v36 }
 0x531   :  { %1004 = vmatpush1.bf16.msra.mxu1 %v926_v37 }
 0x532   :  { %1005 = vmatprep.subr.bf16.mxu1 %v929_v4 }
 0x535   :  { %1006 = vmatpush1.bf16.msra.mxu1 %v928_v39 }
 0x536   :  { %1007 = vmatprep.subr.bf16.mxu1 %v931_v5 }
 0x539   :  { %1008 = vmatpush1.bf16.msra.mxu1 %v930_v40 }
 0x53a   :  { %1009 = vmatprep.subr.bf16.mxu1 %v933_v9 }
 0x53d   :  { %1010 = vmatpush1.bf16.msra.mxu1 %v932_v41 }
 0x53e   :  { %1011 = vmatprep.subr.bf16.mxu1 %v935_v42 }
 0x541   :  { %1012 = vmatpush1.bf16.msra.mxu1 %v934_v62 }
 0x544   :  { %1014 = vmatmul.mubr.bf16.vlgmr.msra.gmra.mrb[12].mxu1 %v938_v43 }
 0x617   :  { %v1015_v44 = vpop.f32.mrb[12].mxu1 }
 0x618   :  { %v1022_v45 = vrot.slane %v1015_v44, 4  ;;  %v1034_v46 = vmul.f32 %v1015_v44, %v1015_v44  ;;  %v1017_v47 = vpop.f32.mrb[13].mxu1 }
 0x619   :  { %v1028_v48 = vrot.slane %v1017_v47, 4  ;;  %v1035_v49 = vmul.f32 %v1017_v47, %v1017_v47  ;;  %v1019_v50 = vpop.f32.mrb[14].mxu1 }
 0x61a   :  { %v1023_v51 = vadd.f32 %v1022_v45, %v1015_v44  ;;  %v1036_v52 = vrot.slane %v1034_v46, 4  ;;  %v1020_v53 = vpop.f32.mrb[15].mxu1 }
 0x61b   :  { %v1029_v54 = vadd.f32 %v1028_v48, %v1017_v47  ;;  %v1042_v55 = vrot.slane %v1035_v49, 4 }
 0x61c   :  { %v1024_v56 = vrot.slane %v1023_v51, 2  ;;  %v1037_v57 = vadd.f32 %v1036_v52, %v1034_v46 }
 0x61d   :  { %v1030_v58 = vrot.slane %v1029_v54, 2  ;;  %v1043_v33 = vadd.f32 %v1042_v55, %v1035_v49 }
 0x61e   :  { %v1025_v59 = vadd.f32 %v1024_v56, %v1023_v51  ;;  %v1038_v38 = vrot.slane %v1037_v57, 2 }
 0x61f   :  { %v1031_v61 = vadd.f32 %v1030_v58, %v1029_v54  ;;  %v1044_v63 = vrot.slane %v1043_v33, 2 }
 0x620   :  { %v1026_v0 = vrot.slane %v1025_v59, 1  ;;  %v1039_v1 = vadd.f32 %v1038_v38, %v1037_v57 }
 0x621   :  { %v1032_v2 = vrot.slane %v1031_v61, 1  ;;  %v1045_v3 = vadd.f32 %v1044_v63, %v1043_v33 }
 0x622   :  { %v1027_v6 = vadd.f32 %v1026_v0, %v1025_v59  ;;  %v1040_v7 = vrot.slane %v1039_v1, 1 }
 0x623   :  { %v1033_v8 = vadd.f32 %v1032_v2, %v1031_v61  ;;  %v1046_v60 = vrot.slane %v1045_v3, 1 }
 0x624   :  { %v1041_v10 = vadd.f32 %v1040_v7, %v1039_v1  ;;  %v1048_v11 = vmul.f32 0.125, %v1027_v6 }
 0x625   :  { %v1047_v12 = vadd.f32 %v1046_v60, %v1045_v3  ;;  %v1049_v13 = vmul.f32 0.125, %v1033_v8 }
 0x626   :  { %v1050_v14 = vmul.f32 0.125, %v1041_v10  ;;  %v1052_v15 = vmul.f32 %v1048_v11, %v1048_v11  ;;  %v1058_v24 = vsub.f32 %v1015_v44, %v1048_v11 }
 0x627   :  { %v1051_v16 = vmul.f32 0.125, %v1047_v12  ;;  %v1053_v17 = vmul.f32 %v1049_v13, %v1049_v13  ;;  %v1059_v26 = vsub.f32 %v1017_v47, %v1049_v13 }
 0x628   :  { %v1054_v18 = vsub.f32 %v1050_v14, %v1052_v15 }
 0x629   :  { %v1055_v19 = vsub.f32 %v1051_v16, %v1053_v17 }
 0x62a   :  { %v1056_v20 = vmax.f32 %v1054_v18, 0.0 }
 0x62b   :  { %v1057_v21 = vmax.f32 %v1055_v19, 0.0 }
 0x62c   :  { %v1060_v22 = vadd.f32 1e-05, %v1056_v20 }
 0x62d   :  { %v1061_v23 = vadd.f32 1e-05, %v1057_v21 }
 0x62e   :  { %1665 = vrsqrt.f32 %v1060_v22 }
 0x62f   :  { %1667 = vrsqrt.f32 %v1061_v23 }
 0x638   :  { %v1666_v25 = vpop.eup %1665 }
 0x639   :  { %v1668_v27 = vpop.eup %1667  ;;  %v1958_v28 = vmul.f32 %v1666_v25, %v1058_v24 }
 0x63a   :  { %v1065_v29 = vmul.f32 %v1668_v27, %v1059_v26 }
 0x63b   :  { %v1066_v30 = vmax.f32 %v1958_v28, 0.0 }
 0x63c   :  { %v1067_v31 = vmax.f32 %v1065_v29, 0.0 }
 0x63d   :  { %1701 = dma.done.wait [#allocation8 + $0x4], 4096 }
 0x63e   :  { %1702 = vsyncadd [#allocation8 + $0x4], 4294963200  ;;  %v1103_v32 = vpack.c.bf16 %v1067_v31, %v1067_v31  ;;  %v1071_v34 = vld [vmem:[#allocation6 + $0x8] sm:$0xff]  ;;  %v1070_v35 = vld [vmem:[#allocation6] sm:$0xff]  ;;  %v1102_v63 = vpack.c.bf16 %v1066_v30, %v1066_v30 }
 0x63f   :  { %v1073_v36 = vld [vmem:[#allocation6 + $0x18] sm:$0xff]  ;;  %1104 = vmatprep.subr.bf16.mxu0 %v1071_v34  ;;  %v1072_v37 = vld [vmem:[#allocation6 + $0x10] sm:$0xff]  ;;  %v1075_v4 = vld [vmem:[#allocation6 + $0x28] sm:$0xff] }
 0x640   :  { %1136 = vmatprep.mubr.bf16.mxu0 %v1103_v32  ;;  %1105 = vmatpush1.bf16.msra.mxu0 %v1070_v35  ;;  %v1074_v39 = vld [vmem:[#allocation6 + $0x20] sm:$0xff]  ;;  %v1077_v5 = vld [vmem:[#allocation6 + $0x38] sm:$0xff]  ;;  %v1076_v40 = vld [vmem:[#allocation6 + $0x30] sm:$0xff] }
 0x641   :  { %1106 = vmatprep.subr.bf16.mxu0 %v1073_v36  ;;  %v1079_v9 = vld [vmem:[#allocation6 + $0x48] sm:$0xff]  ;;  %v1078_v41 = vld [vmem:[#allocation6 + $0x40] sm:$0xff]  ;;  %v1081_v42 = vld [vmem:[#allocation6 + $0x58] sm:$0xff] }
 0x642   :  { %v1080_v62 = vld [vmem:[#allocation6 + $0x50] sm:$0xff]  ;;  %v1083_v43 = vld [vmem:[#allocation6 + $0x68] sm:$0xff]  ;;  %v1082_v44 = vld [vmem:[#allocation6 + $0x60] sm:$0xff] }
 0x643   :  { %v1085_v45 = vld [vmem:[#allocation6 + $0x78] sm:$0xff]  ;;  %v1084_v46 = vld [vmem:[#allocation6 + $0x70] sm:$0xff]  ;;  %v1087_v47 = vld [vmem:[#allocation6 + $0x88] sm:$0xff] }
 0x644   :  { %1107 = vmatpush1.bf16.msra.mxu0 %v1072_v37  ;;  %v1086_v48 = vld [vmem:[#allocation6 + $0x80] sm:$0xff]  ;;  %v1089_v49 = vld [vmem:[#allocation6 + $0x98] sm:$0xff]  ;;  %v1088_v50 = vld [vmem:[#allocation6 + $0x90] sm:$0xff] }
 0x645   :  { %1108 = vmatprep.subr.bf16.mxu0 %v1075_v4  ;;  %v1091_v51 = vld [vmem:[#allocation6 + $0xa8] sm:$0xff]  ;;  %v1090_v52 = vld [vmem:[#allocation6 + $0xa0] sm:$0xff]  ;;  %v1093_v53 = vld [vmem:[#allocation6 + $0xb8] sm:$0xff] }
 0x646   :  { %v1092_v54 = vld [vmem:[#allocation6 + $0xb0] sm:$0xff]  ;;  %v1095_v55 = vld [vmem:[#allocation6 + $0xc8] sm:$0xff]  ;;  %v1094_v56 = vld [vmem:[#allocation6 + $0xc0] sm:$0xff] }
 0x647   :  { %v1097_v57 = vld [vmem:[#allocation6 + $0xd8] sm:$0xff]  ;;  %v1096_v58 = vld [vmem:[#allocation6 + $0xd0] sm:$0xff]  ;;  %v1099_v33 = vld [vmem:[#allocation6 + $0xe8] sm:$0xff] }
 0x648   :  { %1109 = vmatpush1.bf16.msra.mxu0 %v1074_v39  ;;  %v1098_v59 = vld [vmem:[#allocation6 + $0xe0] sm:$0xff]  ;;  %v1101_v38 = vld [vmem:[#allocation6 + $0xf8] sm:$0xff]  ;;  %v1100_v61 = vld [vmem:[#allocation6 + $0xf0] sm:$0xff] }
 0x649   :  { %1110 = vmatprep.subr.bf16.mxu0 %v1077_v5 }
 0x64c   :  { %1111 = vmatpush1.bf16.msra.mxu0 %v1076_v40 }
 0x64d   :  { %1112 = vmatprep.subr.bf16.mxu0 %v1079_v9 }
 0x650   :  { %1113 = vmatpush1.bf16.msra.mxu0 %v1078_v41 }
 0x651   :  { %1114 = vmatprep.subr.bf16.mxu0 %v1081_v42 }
 0x654   :  { %1115 = vmatpush1.bf16.msra.mxu0 %v1080_v62 }
 0x655   :  { %1116 = vmatprep.subr.bf16.mxu0 %v1083_v43 }
 0x658   :  { %1117 = vmatpush1.bf16.msra.mxu0 %v1082_v44 }
 0x659   :  { %1118 = vmatprep.subr.bf16.mxu0 %v1085_v45 }
 0x65c   :  { %1119 = vmatpush1.bf16.msra.mxu0 %v1084_v46 }
 0x65d   :  { %1120 = vmatprep.subr.bf16.mxu0 %v1087_v47 }
 0x660   :  { %1121 = vmatpush1.bf16.msra.mxu0 %v1086_v48 }
 0x661   :  { %1122 = vmatprep.subr.bf16.mxu0 %v1089_v49 }
 0x664   :  { %1123 = vmatpush1.bf16.msra.mxu0 %v1088_v50 }
 0x665   :  { %1124 = vmatprep.subr.bf16.mxu0 %v1091_v51 }
 0x668   :  { %1125 = vmatpush1.bf16.msra.mxu0 %v1090_v52 }
 0x669   :  { %1126 = vmatprep.subr.bf16.mxu0 %v1093_v53 }
 0x66c   :  { %1127 = vmatpush1.bf16.msra.mxu0 %v1092_v54 }
 0x66d   :  { %1128 = vmatprep.subr.bf16.mxu0 %v1095_v55 }
 0x670   :  { %1129 = vmatpush1.bf16.msra.mxu0 %v1094_v56 }
 0x671   :  { %1130 = vmatprep.subr.bf16.mxu0 %v1097_v57 }
 0x674   :  { %1131 = vmatpush1.bf16.msra.mxu0 %v1096_v58 }
 0x675   :  { %1132 = vmatprep.subr.bf16.mxu0 %v1099_v33 }
 0x678   :  { %1133 = vmatpush1.bf16.msra.mxu0 %v1098_v59 }
 0x679   :  { %1134 = vmatprep.subr.bf16.mxu0 %v1101_v38 }
 0x67c   :  { %1135 = vmatpush1.bf16.msra.mxu0 %v1100_v61 }
 0x67f   :  { %1137 = vmatmul.mubr.bf16.vlgmr.msra.gmra.mrb[8].mxu0 %v1102_v63 }
 0x752   :  { %v1138_v0 = vpop.f32.mrb[8].mxu0 }
 0x753   :  { %v1145_v1 = vrot.slane %v1138_v0, 4  ;;  %v1157_v2 = vmul.f32 %v1138_v0, %v1138_v0  ;;  %v1140_v3 = vpop.f32.mrb[9].mxu0 }
 0x754   :  { %v1151_v6 = vrot.slane %v1140_v3, 4  ;;  %v1158_v7 = vmul.f32 %v1140_v3, %v1140_v3  ;;  %v1142_v8 = vpop.f32.mrb[10].mxu0 }
 0x755   :  { %v1146_v60 = vadd.f32 %v1145_v1, %v1138_v0  ;;  %v1159_v10 = vrot.slane %v1157_v2, 4  ;;  %v1143_v11 = vpop.f32.mrb[11].mxu0 }
 0x756   :  { %v1152_v12 = vadd.f32 %v1151_v6, %v1140_v3  ;;  %v1165_v13 = vrot.slane %v1158_v7, 4 }
 0x757   :  { %v1147_v14 = vrot.slane %v1146_v60, 2  ;;  %v1160_v15 = vadd.f32 %v1159_v10, %v1157_v2 }
 0x758   :  { %v1153_v16 = vrot.slane %v1152_v12, 2  ;;  %v1166_v17 = vadd.f32 %v1165_v13, %v1158_v7 }
 0x759   :  { %v1148_v18 = vadd.f32 %v1147_v14, %v1146_v60  ;;  %v1161_v19 = vrot.slane %v1160_v15, 2 }
 0x75a   :  { %v1154_v20 = vadd.f32 %v1153_v16, %v1152_v12  ;;  %v1167_v21 = vrot.slane %v1166_v17, 2 }
 0x75b   :  { %v1149_v22 = vrot.slane %v1148_v18, 1  ;;  %v1162_v23 = vadd.f32 %v1161_v19, %v1160_v15 }
 0x75c   :  { %v1155_v24 = vrot.slane %v1154_v20, 1  ;;  %v1168_v25 = vadd.f32 %v1167_v21, %v1166_v17 }
 0x75d   :  { %v1150_v26 = vadd.f32 %v1149_v22, %v1148_v18  ;;  %v1163_v27 = vrot.slane %v1162_v23, 1 }
 0x75e   :  { %v1156_v28 = vadd.f32 %v1155_v24, %v1154_v20  ;;  %v1169_v29 = vrot.slane %v1168_v25, 1 }
 0x75f   :  { %v1164_v30 = vadd.f32 %v1163_v27, %v1162_v23  ;;  %v1171_v31 = vmul.f32 0.125, %v1150_v26 }
 0x760   :  { %v1170_v32 = vadd.f32 %v1169_v29, %v1168_v25  ;;  %v1172_v34 = vmul.f32 0.125, %v1156_v28 }
 0x761   :  { %v1173_v35 = vmul.f32 0.125, %v1164_v30  ;;  %v1175_v36 = vmul.f32 %v1171_v31, %v1171_v31  ;;  %v1181_v62 = vsub.f32 %v1138_v0, %v1171_v31 }
 0x762   :  { %v1174_v37 = vmul.f32 0.125, %v1170_v32  ;;  %v1176_v4 = vmul.f32 %v1172_v34, %v1172_v34  ;;  %v1182_v44 = vsub.f32 %v1140_v3, %v1172_v34 }
 0x763   :  { %v1177_v39 = vsub.f32 %v1173_v35, %v1175_v36 }
 0x764   :  { %v1178_v5 = vsub.f32 %v1174_v37, %v1176_v4 }
 0x765   :  { %v1179_v40 = vmax.f32 %v1177_v39, 0.0 }
 0x766   :  { %v1180_v9 = vmax.f32 %v1178_v5, 0.0 }
 0x767   :  { %v1183_v41 = vadd.f32 1e-05, %v1179_v40 }
 0x768   :  { %v1184_v42 = vadd.f32 1e-05, %v1180_v9 }
 0x769   :  { %1669 = vrsqrt.f32 %v1183_v41 }
 0x76a   :  { %1671 = vrsqrt.f32 %v1184_v42 }
 0x773   :  { %v1670_v43 = vpop.eup %1669 }
 0x774   :  { %v1672_v45 = vpop.eup %1671  ;;  %v1964_v46 = vmul.f32 %v1670_v43, %v1181_v62 }
 0x775   :  { %v1188_v47 = vmul.f32 %v1672_v45, %v1182_v44 }
 0x776   :  { %v1189_v48 = vmax.f32 %v1964_v46, 0.0 }
 0x777   :  { %v1190_v49 = vmax.f32 %v1188_v47, 0.0 }
 0x778   :  { %1703 = dma.done.wait [#allocation8 + $0x5], 4096 }
 0x779   :  { %1704 = vsyncadd [#allocation8 + $0x5], 4294963200  ;;  %v1226_v50 = vpack.c.bf16 %v1190_v49, %v1190_v49  ;;  %v1194_v51 = vld [vmem:[#allocation7 + $0x8] sm:$0xff]  ;;  %v1193_v52 = vld [vmem:[#allocation7] sm:$0xff]  ;;  %v1225_v21 = vpack.c.bf16 %v1189_v48, %v1189_v48  ;;  %vm1491_vm4 = vcmask 7168  }
 0x77a   :  { %v1196_v53 = vld [vmem:[#allocation7 + $0x18] sm:$0xff]  ;;  %1227 = vmatprep.subr.bf16.mxu0 %v1194_v51  ;;  %v1195_v54 = vld [vmem:[#allocation7 + $0x10] sm:$0xff]  ;;  %v1198_v55 = vld [vmem:[#allocation7 + $0x28] sm:$0xff] }
 0x77b   :  { %1259 = vmatprep.mubr.bf16.mxu0 %v1226_v50  ;;  %1228 = vmatpush1.bf16.msra.mxu0 %v1193_v52  ;;  %v1197_v56 = vld [vmem:[#allocation7 + $0x20] sm:$0xff]  ;;  %v1200_v57 = vld [vmem:[#allocation7 + $0x38] sm:$0xff]  ;;  %v1199_v58 = vld [vmem:[#allocation7 + $0x30] sm:$0xff] }
 0x77c   :  { %1229 = vmatprep.subr.bf16.mxu0 %v1196_v53  ;;  %v1202_v33 = vld [vmem:[#allocation7 + $0x48] sm:$0xff]  ;;  %v1201_v59 = vld [vmem:[#allocation7 + $0x40] sm:$0xff]  ;;  %v1204_v38 = vld [vmem:[#allocation7 + $0x58] sm:$0xff] }
 0x77d   :  { %v1203_v61 = vld [vmem:[#allocation7 + $0x50] sm:$0xff]  ;;  %v1206_v63 = vld [vmem:[#allocation7 + $0x68] sm:$0xff]  ;;  %v1205_v0 = vld [vmem:[#allocation7 + $0x60] sm:$0xff] }
 0x77e   :  { %v1208_v1 = vld [vmem:[#allocation7 + $0x78] sm:$0xff]  ;;  %v1207_v2 = vld [vmem:[#allocation7 + $0x70] sm:$0xff]  ;;  %v1210_v3 = vld [vmem:[#allocation7 + $0x88] sm:$0xff] }
 0x77f   :  { %1230 = vmatpush1.bf16.msra.mxu0 %v1195_v54  ;;  %v1209_v6 = vld [vmem:[#allocation7 + $0x80] sm:$0xff]  ;;  %v1212_v7 = vld [vmem:[#allocation7 + $0x98] sm:$0xff]  ;;  %v1211_v8 = vld [vmem:[#allocation7 + $0x90] sm:$0xff] }
 0x780   :  { %1231 = vmatprep.subr.bf16.mxu0 %v1198_v55  ;;  %v1214_v60 = vld [vmem:[#allocation7 + $0xa8] sm:$0xff]  ;;  %v1213_v10 = vld [vmem:[#allocation7 + $0xa0] sm:$0xff]  ;;  %v1216_v11 = vld [vmem:[#allocation7 + $0xb8] sm:$0xff] }
 0x781   :  { %v1215_v12 = vld [vmem:[#allocation7 + $0xb0] sm:$0xff]  ;;  %v1218_v13 = vld [vmem:[#allocation7 + $0xc8] sm:$0xff]  ;;  %v1217_v14 = vld [vmem:[#allocation7 + $0xc0] sm:$0xff] }
 0x782   :  { %v1220_v15 = vld [vmem:[#allocation7 + $0xd8] sm:$0xff]  ;;  %v1219_v16 = vld [vmem:[#allocation7 + $0xd0] sm:$0xff]  ;;  %v1222_v17 = vld [vmem:[#allocation7 + $0xe8] sm:$0xff] }
 0x783   :  { %1232 = vmatpush1.bf16.msra.mxu0 %v1197_v56  ;;  %v1221_v18 = vld [vmem:[#allocation7 + $0xe0] sm:$0xff]  ;;  %v1224_v19 = vld [vmem:[#allocation7 + $0xf8] sm:$0xff]  ;;  %v1223_v20 = vld [vmem:[#allocation7 + $0xf0] sm:$0xff] }
 0x784   :  { %1233 = vmatprep.subr.bf16.mxu0 %v1200_v57  ;;  %v1673_v22 = vld [vmem:[%s2023_s2 + $0x40] sm:$0xff]   ;;  %v1675_v24 = vld [vmem:[%s2023_s2 + $0x48] sm:$0xff]   ;;  %v1677_v26 = vld [vmem:[%s2023_s2 + $0x50] sm:$0xff]  }
 0x785   :  { %v1674_v23 = vld [vmem:[%s2023_s2] sm:$0xff]   ;;  %1590 = vmatprep.subr.bf16.mxu1 %v1673_v22  ;;  %v1676_v25 = vld [vmem:[%s2023_s2 + $0x8] sm:$0xff]   ;;  %v1678_v27 = vld [vmem:[%s2023_s2 + $0x10] sm:$0xff]  }
 0x786   :  { %1591 = vmatpush3.bf16.msra.mxu1 %v1674_v23  ;;  %v1679_v28 = vld [vmem:[%s2023_s2 + $0x58] sm:$0xff]   ;;  %v1681_v30 = vld [vmem:[%s2023_s2 + $0x60] sm:$0xff]   ;;  %v1683_v32 = vld [vmem:[%s2023_s2 + $0x68] sm:$0xff]  }
 0x787   :  { %1234 = vmatpush1.bf16.msra.mxu0 %v1199_v58  ;;  %1592 = vmatprep.subr.bf16.mxu1 %v1675_v24  ;;  %v1680_v29 = vld [vmem:[%s2023_s2 + $0x18] sm:$0xff]   ;;  %v1682_v31 = vld [vmem:[%s2023_s2 + $0x20] sm:$0xff]   ;;  %v1684_v34 = vld [vmem:[%s2023_s2 + $0x28] sm:$0xff]  }
 0x788   :  { %1235 = vmatprep.subr.bf16.mxu0 %v1202_v33  ;;  %v1685_v35 = vld [vmem:[%s2023_s2 + $0x70] sm:$0xff]   ;;  %v1687_v37 = vld [vmem:[%s2023_s2 + $0x78] sm:$0xff]  }
 0x789   :  { %v1686_v36 = vld [vmem:[%s2023_s2 + $0x30] sm:$0xff]   ;;  %v1688_v4 = vld [vmem:[%s2023_s2 + $0x38] sm:$0xff]  }
 0x78a   :  { %1593 = vmatpush3.bf16.msra.mxu1 %v1676_v25 }
 0x78b   :  { %1236 = vmatpush1.bf16.msra.mxu0 %v1201_v59  ;;  %1594 = vmatprep.subr.bf16.mxu1 %v1677_v26 }
 0x78c   :  { %1237 = vmatprep.subr.bf16.mxu0 %v1204_v38 }
 0x78e   :  { %1595 = vmatpush3.bf16.msra.mxu1 %v1678_v27  ;;  %v1565_v27 = vld [vmem:[#allocation9] ss:$0 sm:$0xff] }
 0x78f   :  { %1238 = vmatpush1.bf16.msra.mxu0 %v1203_v61  ;;  %1596 = vmatprep.subr.bf16.mxu1 %v1679_v28 }
 0x790   :  { %1239 = vmatprep.subr.bf16.mxu0 %v1206_v63 }
 0x792   :  { %1597 = vmatpush3.bf16.msra.mxu1 %v1680_v29 }
 0x793   :  { %1240 = vmatpush1.bf16.msra.mxu0 %v1205_v0  ;;  %1598 = vmatprep.subr.bf16.mxu1 %v1681_v30 }
 0x794   :  { %1241 = vmatprep.subr.bf16.mxu0 %v1208_v1 }
 0x796   :  { %1599 = vmatpush3.bf16.msra.mxu1 %v1682_v31 }
 0x797   :  { %1242 = vmatpush1.bf16.msra.mxu0 %v1207_v2  ;;  %1600 = vmatprep.subr.bf16.mxu1 %v1683_v32 }
 0x798   :  { %1243 = vmatprep.subr.bf16.mxu0 %v1210_v3 }
 0x79a   :  { %1601 = vmatpush3.bf16.msra.mxu1 %v1684_v34 }
 0x79b   :  { %1244 = vmatpush1.bf16.msra.mxu0 %v1209_v6  ;;  %1602 = vmatprep.subr.bf16.mxu1 %v1685_v35 }
 0x79c   :  { %1245 = vmatprep.subr.bf16.mxu0 %v1212_v7 }
 0x79e   :  { %1603 = vmatpush3.bf16.msra.mxu1 %v1686_v36 }
 0x79f   :  { %1246 = vmatpush1.bf16.msra.mxu0 %v1211_v8  ;;  %1604 = vmatprep.subr.bf16.mxu1 %v1687_v37 }
 0x7a0   :  { %1247 = vmatprep.subr.bf16.mxu0 %v1214_v60 }
 0x7a2   :  { %1605 = vmatpush3.bf16.msra.mxu1 %v1688_v4 }
 0x7a3   :  { %1248 = vmatpush1.bf16.msra.mxu0 %v1213_v10 }
 0x7a4   :  { %1249 = vmatprep.subr.bf16.mxu0 %v1216_v11 }
 0x7a7   :  { %1250 = vmatpush1.bf16.msra.mxu0 %v1215_v12 }
 0x7a8   :  { %1251 = vmatprep.subr.bf16.mxu0 %v1218_v13 }
 0x7ab   :  { %1252 = vmatpush1.bf16.msra.mxu0 %v1217_v14 }
 0x7ac   :  { %1253 = vmatprep.subr.bf16.mxu0 %v1220_v15 }
 0x7af   :  { %1254 = vmatpush1.bf16.msra.mxu0 %v1219_v16 }
 0x7b0   :  { %1255 = vmatprep.subr.bf16.mxu0 %v1222_v17 }
 0x7b3   :  { %1256 = vmatpush1.bf16.msra.mxu0 %v1221_v18 }
 0x7b4   :  { %1257 = vmatprep.subr.bf16.mxu0 %v1224_v19 }
 0x7b7   :  { %1258 = vmatpush1.bf16.msra.mxu0 %v1223_v20 }
 0x7ba   :  { %1260 = vmatmul.mubr.bf16.vlgmr.msra.gmra.mrb[12].mxu0 %v1225_v21 }
 0x88d   :  { %v1261_v39 = vpop.f32.mrb[12].mxu0 }
 0x88e   :  { %v1268_v5 = vrot.slane %v1261_v39, 4  ;;  %v1280_v40 = vmul.f32 %v1261_v39, %v1261_v39  ;;  %v1263_v9 = vpop.f32.mrb[13].mxu0 }
 0x88f   :  { %v1274_v41 = vrot.slane %v1263_v9, 4  ;;  %v1281_v42 = vmul.f32 %v1263_v9, %v1263_v9  ;;  %v1265_v62 = vpop.f32.mrb[14].mxu0 }
 0x890   :  { %v1269_v43 = vadd.f32 %v1268_v5, %v1261_v39  ;;  %v1282_v44 = vrot.slane %v1280_v40, 4  ;;  %v1266_v45 = vpop.f32.mrb[15].mxu0 }
 0x891   :  { %v1275_v46 = vadd.f32 %v1274_v41, %v1263_v9  ;;  %v1288_v47 = vrot.slane %v1281_v42, 4 }
 0x892   :  { %v1270_v48 = vrot.slane %v1269_v43, 2  ;;  %v1283_v49 = vadd.f32 %v1282_v44, %v1280_v40 }
 0x893   :  { %v1276_v50 = vrot.slane %v1275_v46, 2  ;;  %v1289_v51 = vadd.f32 %v1288_v47, %v1281_v42 }
 0x894   :  { %v1271_v52 = vadd.f32 %v1270_v48, %v1269_v43  ;;  %v1284_v53 = vrot.slane %v1283_v49, 2 }
 0x895   :  { %v1290_v54 = vrot.slane %v1289_v51, 2  ;;  %v1277_v55 = vadd.f32 %v1276_v50, %v1275_v46 }
 0x896   :  { %v1272_v56 = vrot.slane %v1271_v52, 1  ;;  %v1285_v57 = vadd.f32 %v1284_v53, %v1283_v49 }
 0x897   :  { %v1291_v58 = vadd.f32 %v1290_v54, %v1289_v51  ;;  %v1278_v33 = vrot.slane %v1277_v55, 1 }
 0x898   :  { %v1273_v59 = vadd.f32 %v1272_v56, %v1271_v52  ;;  %v1286_v38 = vrot.slane %v1285_v57, 1 }
 0x899   :  { %v1292_v61 = vrot.slane %v1291_v58, 1  ;;  %v1279_v63 = vadd.f32 %v1278_v33, %v1277_v55 }
 0x89a   :  { %v1287_v0 = vadd.f32 %v1286_v38, %v1285_v57  ;;  %v1294_v1 = vmul.f32 0.125, %v1273_v59 }
 0x89b   :  { %v1293_v2 = vadd.f32 %v1292_v61, %v1291_v58  ;;  %v1295_v3 = vmul.f32 0.125, %v1279_v63 }
 0x89c   :  { %v1296_v6 = vmul.f32 0.125, %v1287_v0  ;;  %v1298_v7 = vmul.f32 %v1294_v1, %v1294_v1  ;;  %v1304_v16 = vsub.f32 %v1261_v39, %v1294_v1 }
 0x89d   :  { %v1297_v8 = vmul.f32 0.125, %v1293_v2  ;;  %v1299_v60 = vmul.f32 %v1295_v3, %v1295_v3  ;;  %v1305_v18 = vsub.f32 %v1263_v9, %v1295_v3 }
 0x89e   :  { %v1300_v10 = vsub.f32 %v1296_v6, %v1298_v7 }
 0x89f   :  { %v1301_v11 = vsub.f32 %v1297_v8, %v1299_v60 }
 0x8a0   :  { %v1302_v12 = vmax.f32 %v1300_v10, 0.0 }
 0x8a1   :  { %v1303_v13 = vmax.f32 %v1301_v11, 0.0 }
 0x8a2   :  { %v1306_v14 = vadd.f32 1e-05, %v1302_v12 }
 0x8a3   :  { %v1307_v15 = vadd.f32 1e-05, %v1303_v13 }
 0x8a4   :  { %1689 = vrsqrt.f32 %v1306_v14 }
 0x8a5   :  { %1691 = vrsqrt.f32 %v1307_v15 }
 0x8ae   :  { %v1690_v17 = vpop.eup %1689 }
 0x8af   :  { %v1692_v19 = vpop.eup %1691  ;;  %v1310_v20 = vmul.f32 %v1690_v17, %v1304_v16 }
 0x8b0   :  { %v1311_v21 = vmul.f32 %v1692_v19, %v1305_v18 }
 0x8b1   :  { %v1312_v22 = vmax.f32 %v1310_v20, 0.0 }
 0x8b2   :  { %v1313_v23 = vmax.f32 %v1311_v21, 0.0 }
 0x8b3   :  { %v1346_v25 = vpack.c.bf16 %v1312_v22, %v1312_v22 }
 0x8b4   :  { %v1347_v24 = vpack.c.bf16 %v1313_v23, %v1313_v23 }
 0x8b6   :  { %1483 = vmatprep.mubr.bf16.mxu1 %v1347_v24 }
 0x8b7   :  { %1484 = vmatmul.mubr.bf16.vlgmr.msra.gmra.mrb[16].mxu1 %v1346_v25 }
 0x98a   :  { %v1606_v26 = vpop.f32.mrb[16].mxu1 }
 0x98b   :  { %v1607_v28 = vpop.f32.mrb[17].mxu1 }
 0x98c   :  { %v1608_v29 = vadd.f32 %v1607_v28, %v1606_v26  ;;  %v1609_v30 = vpop.f32.mrb[18].mxu1 }
 0x98d   :  { %v1610_v31 = vpop.f32.mrb[19].mxu1 }
 0x98e   :  { %v1486_v32 = vadd.f32 %v1608_v29, %v1565_v27 }
 0x990   :  { %1492 = vst.msk [vmem:[%s2031_s10] sm:$0xff] %vm1491_vm4, %v1486_v32 }
 0x991   :  { %1497 = vsyncmov [#allocation8] }
 0x994   :  { %s1498_s24 = vpop.sfrf %1497 }
 0x995   :  { %p1582_p0 = scmp.ne.s32.totalorder %s1498_s24, 0 }
 0x997   :  { %1502 = shalt.err (%p1582_p0)  }
 0x998   :  { %1504 = vsyncmov [#allocation8 + $0x1] }
 0x99b   :  { %s1505_s25 = vpop.sfrf %1504 }
 0x99c   :  { %p1583_p1 = scmp.ne.s32.totalorder %s1505_s25, 0 }
 0x99e   :  { %1509 = shalt.err (%p1583_p1)  }
 0x99f   :  { %1511 = vsyncmov [#allocation8 + $0x2] }
 0x9a2   :  { %s1512_s26 = vpop.sfrf %1511 }
 0x9a3   :  { %p1584_p2 = scmp.ne.s32.totalorder %s1512_s26, 0 }
 0x9a5   :  { %1516 = shalt.err (%p1584_p2)  }
 0x9a6   :  { %1518 = vsyncmov [#allocation8 + $0x3] }
 0x9a9   :  { %s1519_s27 = vpop.sfrf %1518 }
 0x9aa   :  { %p1585_p3 = scmp.ne.s32.totalorder %s1519_s27, 0 }
 0x9ac   :  { %1523 = shalt.err (%p1585_p3)  }
 0x9ad   :  { %1525 = vsyncmov [#allocation8 + $0x4] }
 0x9b0   :  { %s1526_s19 = vpop.sfrf %1525 }
 0x9b1   :  { %p1586_p4 = scmp.ne.s32.totalorder %s1526_s19, 0 }
 0x9b3   :  { %1530 = shalt.err (%p1586_p4)  }
 0x9b4   :  { %1532 = vsyncmov [#allocation8 + $0x5] }
 0x9b7   :  { %s1533_s10 = vpop.sfrf %1532 }
 0x9b8   :  { %p1587_p5 = scmp.ne.s32.totalorder %s1533_s10, 0 }
 0x9ba   :  { %1537 = shalt.err (%p1587_p5)  }

</bundles_post_ra>
